<compile_context>
chip_gen: v6e
topology: v6e:2x2x1
jax: 0.10.0
libtpu: 0.0.40
codegen_flags: <defaults>
</compile_context>

<pallas_src>
import jax
import jax.numpy as jnp
from jax.experimental import pallas as pl
from jax.experimental.pallas import tpu as pltpu

# Small, forward-consistent shapes
INPUT_SIZE = 16
HIDDEN_SIZE = 32
OUT_SIZE = 16
BATCH = 2
SEQ = 8

OUT_LANES = 128  # lane-dense fc output slab (sliced back to OUT_SIZE outside)


def phasefield_lstm_kernel(x_ref, wih0_ref, whh0_ref, b0_ref,
                           w1_ref, b1_ref, fcw_ref, fcb_ref, out_ref):
    # x_ref:    [T*B, D]   time-major, batch padded to 8 sublanes, flattened
    # wih0_ref: [D, 4H]    whh0_ref: [H, 4H]    b0_ref: [1, 4H]
    # w1_ref:   [2H, 4H]   (row-concat of Wih_l1^T and Whh_l1^T)
    # b1_ref:   [1, 4H]
    # fcw_ref:  [H, 128]   (fc weight padded to 128 lanes)  fcb_ref: [1, 128]
    # out_ref:  [B, 128]
    B = out_ref.shape[0]
    H = whh0_ref.shape[0]
    T = x_ref.shape[0] // B

    # Hoist every invariant weight/bias load out of the recurrence.
    wih0 = wih0_ref[...]
    whh0 = whh0_ref[...]
    b0 = b0_ref[...]
    w1 = w1_ref[...]
    b1 = b1_ref[...]

    # Precompute the layer-0 input projection for ALL timesteps in one matmul:
    # [T*B, D] @ [D, 4H] + b0  -> [T*B, 4H]
    xproj = jnp.dot(x_ref[...], wih0,
                    preferred_element_type=jnp.float32) + b0

    def gates_to_hc(gates, c):
        # One sigmoid + one tanh over the full [B, 4H] vreg, then slice.
        sig = jax.nn.sigmoid(gates)
        th = jnp.tanh(gates)
        i = sig[:, 0 * H:1 * H]
        f = sig[:, 1 * H:2 * H]
        g = th[:, 2 * H:3 * H]
        o = sig[:, 3 * H:4 * H]
        c_new = f * c + i * g
        h_new = o * jnp.tanh(c_new)
        return h_new, c_new

    zeros = jnp.zeros((B, H), jnp.float32)
    h0, c0, h1, c1 = zeros, zeros, zeros, zeros

    # T is small and static -> full unroll with value-carried state.
    for t in range(T):
        # layer 0: input projection already done, only the recurrent matmul.
        g0 = xproj[t * B:(t + 1) * B, :] + jnp.dot(
            h0, whh0, preferred_element_type=jnp.float32)
        h0, c0 = gates_to_hc(g0, c0)

        # layer 1: single fused matmul  [B, 2H] @ [2H, 4H]
        xh = jnp.concatenate([h0, h1], axis=1)
        g1 = jnp.dot(xh, w1, preferred_element_type=jnp.float32) + b1
        h1, c1 = gates_to_hc(g1, c1)

    # last timestep of top layer -> (eval-mode dropout = identity) -> fc
    out_ref[...] = (jnp.dot(h1, fcw_ref[...],
                            preferred_element_type=jnp.float32)
                    + fcb_ref[...])


def phasefield_lstm_forward(x, params):
    """x: [B, T, input_size] float32 (PyTorch batch_first convention)."""
    if x.ndim == 2:                       # matches the unsqueeze(0) in forward
        x = x[None]
    B, T, D = x.shape
    H = params["w_hh_l0"].shape[1]
    out_cols = params["fc_w"].shape[0]

    # Pad batch to the 8-sublane f32 minimum so every vreg/MXU op is full.
    B_pad = max(8, ((B + 7) // 8) * 8)
    x_p = jnp.pad(x.astype(jnp.float32), ((0, B_pad - B), (0, 0), (0, 0)))

    # glue (plain JAX): time-major transpose + flatten, weight transposes,
    # bias folding, layer-1 RHS fusion, lane-dense fc weight padding.
    x_flat = jnp.transpose(x_p, (1, 0, 2)).reshape(T * B_pad, D)   # [T*B, D]
    wih0T = params["w_ih_l0"].T                                    # [D, 4H]
    whh0T = params["w_hh_l0"].T                                    # [H, 4H]
    b0 = (params["b_ih_l0"] + params["b_hh_l0"])[None, :]          # [1, 4H]
    w1cat = jnp.concatenate(
        [params["w_ih_l1"].T, params["w_hh_l1"].T], axis=0)        # [2H, 4H]
    b1 = (params["b_ih_l1"] + params["b_hh_l1"])[None, :]          # [1, 4H]
    fcwT = jnp.zeros((H, OUT_LANES), jnp.float32)
    fcwT = fcwT.at[:, :out_cols].set(params["fc_w"].T)             # [H, 128]
    fcb = jnp.zeros((1, OUT_LANES), jnp.float32)
    fcb = fcb.at[:, :out_cols].set(params["fc_b"][None, :])        # [1, 128]

    vmem = pl.BlockSpec(memory_space=pltpu.MemorySpace.VMEM)
    out = pl.pallas_call(
        phasefield_lstm_kernel,
        out_shape=jax.ShapeDtypeStruct((B_pad, OUT_LANES), jnp.float32),
        in_specs=[vmem] * 8,
        out_specs=vmem,
    )(x_flat, wih0T, whh0T, b0, w1cat, b1, fcwT, fcb)
    return out[:B, :out_cols]


def _xavier(key, shape):
    fan_out, fan_in = shape
    limit = (6.0 / (fan_in + fan_out)) ** 0.5
    return jax.random.uniform(key, shape, jnp.float32, -limit, limit)


def init_params(key, input_size=INPUT_SIZE, hidden=HIDDEN_SIZE, out=OUT_SIZE):
    ks = jax.random.split(key, 5)
    H4 = 4 * hidden
    return {
        # LSTM layer 0
        "w_ih_l0": _xavier(ks[0], (H4, input_size)),
        "w_hh_l0": _xavier(ks[1], (H4, hidden)),
        "b_ih_l0": jnp.zeros((H4,), jnp.float32),
        "b_hh_l0": jnp.zeros((H4,), jnp.float32),
        # LSTM layer 1
        "w_ih_l1": _xavier(ks[2], (H4, hidden)),
        "w_hh_l1": _xavier(ks[3], (H4, hidden)),
        "b_ih_l1": jnp.zeros((H4,), jnp.float32),
        "b_hh_l1": jnp.zeros((H4,), jnp.float32),
        # fc
        "fc_w": _xavier(ks[4], (out, hidden)),
        "fc_b": jnp.zeros((out,), jnp.float32),
    }


def reference_forward(x, params):
    """Pure-JAX reference replicating nn.LSTM (i,f,g,o) + Linear."""
    B, T, D = x.shape
    H = params["w_hh_l0"].shape[1]

    def cell(x_t, h, c, w_ih, w_hh, b_ih, b_hh):
        g = x_t @ w_ih.T + b_ih + h @ w_hh.T + b_hh
        i = jax.nn.sigmoid(g[:, 0 * H:1 * H])
        f = jax.nn.sigmoid(g[:, 1 * H:2 * H])
        gg = jnp.tanh(g[:, 2 * H:3 * H])
        o = jax.nn.sigmoid(g[:, 3 * H:4 * H])
        c = f * c + i * gg
        return o * jnp.tanh(c), c

    h0 = jnp.zeros((B, H)); c0 = jnp.zeros((B, H))
    h1 = jnp.zeros((B, H)); c1 = jnp.zeros((B, H))
    for t in range(T):
        h0, c0 = cell(x[:, t, :], h0, c0, params["w_ih_l0"], params["w_hh_l0"],
                      params["b_ih_l0"], params["b_hh_l0"])
        h1, c1 = cell(h0, h1, c1, params["w_ih_l1"], params["w_hh_l1"],
                      params["b_ih_l1"], params["b_hh_l1"])
    return h1 @ params["fc_w"].T + params["fc_b"]


if __name__ == "__main__":
    key = jax.random.PRNGKey(0)
    k_x, k_p = jax.random.split(key)
    x = jax.random.normal(k_x, (BATCH, SEQ, INPUT_SIZE), jnp.float32)
    params = init_params(k_p)

    out = phasefield_lstm_forward(x, params)
    out = jax.block_until_ready(out)

    ref = reference_forward(x, params)
    assert out.shape == (BATCH, OUT_SIZE)
    assert jnp.allclose(out, ref, atol=1e-4, rtol=1e-4)
    print("KERNEL_OK")
</pallas_src>

<mosaic_0001>
module attributes {stable_mosaic.version = 11 : i64} {
  func.func @phasefield_lstm_kernel(%arg0: memref<64x16xf32, #tpu.memory_space<vmem>>, %arg1: memref<16x128xf32, #tpu.memory_space<vmem>>, %arg2: memref<32x128xf32, #tpu.memory_space<vmem>>, %arg3: memref<1x128xf32, #tpu.memory_space<vmem>>, %arg4: memref<64x128xf32, #tpu.memory_space<vmem>>, %arg5: memref<1x128xf32, #tpu.memory_space<vmem>>, %arg6: memref<32x128xf32, #tpu.memory_space<vmem>>, %arg7: memref<1x128xf32, #tpu.memory_space<vmem>>, %arg8: memref<8x128xf32, #tpu.memory_space<vmem>>) attributes {dimension_semantics = [], scalar_prefetch = 0 : i64, scratch_operands = 0 : i64, tpu.core_type = #tpu.core_type<tc>} {
    %c0 = arith.constant 0 : index
    %c0_0 = arith.constant 0 : index
    %0 = vector.load %arg1[%c0, %c0_0] : memref<16x128xf32, #tpu.memory_space<vmem>>, vector<16x128xf32>
    %c0_1 = arith.constant 0 : index
    %c0_2 = arith.constant 0 : index
    %1 = vector.load %arg2[%c0_1, %c0_2] : memref<32x128xf32, #tpu.memory_space<vmem>>, vector<32x128xf32>
    %c0_3 = arith.constant 0 : index
    %c0_4 = arith.constant 0 : index
    %2 = vector.load %arg3[%c0_3, %c0_4] : memref<1x128xf32, #tpu.memory_space<vmem>>, vector<1x128xf32>
    %c0_5 = arith.constant 0 : index
    %c0_6 = arith.constant 0 : index
    %3 = vector.load %arg4[%c0_5, %c0_6] : memref<64x128xf32, #tpu.memory_space<vmem>>, vector<64x128xf32>
    %c0_7 = arith.constant 0 : index
    %c0_8 = arith.constant 0 : index
    %4 = vector.load %arg5[%c0_7, %c0_8] : memref<1x128xf32, #tpu.memory_space<vmem>>, vector<1x128xf32>
    %c0_9 = arith.constant 0 : index
    %c0_10 = arith.constant 0 : index
    %5 = vector.load %arg0[%c0_9, %c0_10] : memref<64x16xf32, #tpu.memory_space<vmem>>, vector<64x16xf32>
    %cst = arith.constant dense<0.000000e+00> : vector<64x128xf32>
    %6 = tpu.matmul %5, %0, %cst {dimension_numbers = #tpu.dot_dimension_numbers<[1], [0], [0], [1], [0, 0, 1, 1], [], []>} : vector<64x16xf32>, vector<16x128xf32>, vector<64x128xf32> -> vector<64x128xf32>
    %7 = vector.broadcast %2 : vector<1x128xf32> to vector<64x128xf32>
    %8 = arith.addf %6, %7 : vector<64x128xf32>
    %cst_11 = arith.constant 0.000000e+00 : f32
    %9 = vector.broadcast %cst_11 : f32 to vector<8x32xf32>
    %10 = vector.extract_strided_slice %8 {offsets = [0, 0], sizes = [8, 128], strides = [1, 1]} : vector<64x128xf32> to vector<8x128xf32>
    %cst_12 = arith.constant dense<0.000000e+00> : vector<8x128xf32>
    %11 = tpu.matmul %9, %1, %cst_12 {dimension_numbers = #tpu.dot_dimension_numbers<[1], [0], [0], [1], [0, 0, 1, 1], [], []>} : vector<8x32xf32>, vector<32x128xf32>, vector<8x128xf32> -> vector<8x128xf32>
    %12 = arith.addf %10, %11 : vector<8x128xf32>
    %13 = arith.negf %12 : vector<8x128xf32>
    %14 = math.exp %13 : vector<8x128xf32>
    %cst_13 = arith.constant 1.000000e+00 : f32
    %15 = vector.broadcast %cst_13 : f32 to vector<8x128xf32>
    %16 = arith.addf %15, %14 : vector<8x128xf32>
    %17 = arith.divf %15, %16 : vector<8x128xf32>
    %18 = math.tanh %12 : vector<8x128xf32>
    %19 = vector.extract_strided_slice %17 {offsets = [0, 0], sizes = [8, 32], strides = [1, 1]} : vector<8x128xf32> to vector<8x32xf32>
    %20 = vector.extract_strided_slice %17 {offsets = [0, 32], sizes = [8, 32], strides = [1, 1]} : vector<8x128xf32> to vector<8x32xf32>
    %21 = vector.extract_strided_slice %18 {offsets = [0, 64], sizes = [8, 32], strides = [1, 1]} : vector<8x128xf32> to vector<8x32xf32>
    %22 = vector.extract_strided_slice %17 {offsets = [0, 96], sizes = [8, 32], strides = [1, 1]} : vector<8x128xf32> to vector<8x32xf32>
    %23 = arith.mulf %20, %9 : vector<8x32xf32>
    %24 = arith.mulf %19, %21 : vector<8x32xf32>
    %25 = arith.addf %23, %24 : vector<8x32xf32>
    %26 = math.tanh %25 : vector<8x32xf32>
    %27 = arith.mulf %22, %26 : vector<8x32xf32>
    %28 = tpu.concatenate %27, %9 in 1 : vector<8x32xf32>, vector<8x32xf32> -> vector<8x64xf32>
    %cst_14 = arith.constant dense<0.000000e+00> : vector<8x128xf32>
    %29 = tpu.matmul %28, %3, %cst_14 {dimension_numbers = #tpu.dot_dimension_numbers<[1], [0], [0], [1], [0, 0, 1, 1], [], []>} : vector<8x64xf32>, vector<64x128xf32>, vector<8x128xf32> -> vector<8x128xf32>
    %30 = vector.broadcast %4 : vector<1x128xf32> to vector<8x128xf32>
    %31 = arith.addf %29, %30 : vector<8x128xf32>
    %32 = arith.negf %31 : vector<8x128xf32>
    %33 = math.exp %32 : vector<8x128xf32>
    %cst_15 = arith.constant 1.000000e+00 : f32
    %34 = vector.broadcast %cst_15 : f32 to vector<8x128xf32>
    %35 = arith.addf %34, %33 : vector<8x128xf32>
    %36 = arith.divf %34, %35 : vector<8x128xf32>
    %37 = math.tanh %31 : vector<8x128xf32>
    %38 = vector.extract_strided_slice %36 {offsets = [0, 0], sizes = [8, 32], strides = [1, 1]} : vector<8x128xf32> to vector<8x32xf32>
    %39 = vector.extract_strided_slice %36 {offsets = [0, 32], sizes = [8, 32], strides = [1, 1]} : vector<8x128xf32> to vector<8x32xf32>
    %40 = vector.extract_strided_slice %37 {offsets = [0, 64], sizes = [8, 32], strides = [1, 1]} : vector<8x128xf32> to vector<8x32xf32>
    %41 = vector.extract_strided_slice %36 {offsets = [0, 96], sizes = [8, 32], strides = [1, 1]} : vector<8x128xf32> to vector<8x32xf32>
    %42 = arith.mulf %39, %9 : vector<8x32xf32>
    %43 = arith.mulf %38, %40 : vector<8x32xf32>
    %44 = arith.addf %42, %43 : vector<8x32xf32>
    %45 = math.tanh %44 : vector<8x32xf32>
    %46 = arith.mulf %41, %45 : vector<8x32xf32>
    %47 = vector.extract_strided_slice %8 {offsets = [8, 0], sizes = [8, 128], strides = [1, 1]} : vector<64x128xf32> to vector<8x128xf32>
    %cst_16 = arith.constant dense<0.000000e+00> : vector<8x128xf32>
    %48 = tpu.matmul %27, %1, %cst_16 {dimension_numbers = #tpu.dot_dimension_numbers<[1], [0], [0], [1], [0, 0, 1, 1], [], []>} : vector<8x32xf32>, vector<32x128xf32>, vector<8x128xf32> -> vector<8x128xf32>
    %49 = arith.addf %47, %48 : vector<8x128xf32>
    %50 = arith.negf %49 : vector<8x128xf32>
    %51 = math.exp %50 : vector<8x128xf32>
    %cst_17 = arith.constant 1.000000e+00 : f32
    %52 = vector.broadcast %cst_17 : f32 to vector<8x128xf32>
    %53 = arith.addf %52, %51 : vector<8x128xf32>
    %54 = arith.divf %52, %53 : vector<8x128xf32>
    %55 = math.tanh %49 : vector<8x128xf32>
    %56 = vector.extract_strided_slice %54 {offsets = [0, 0], sizes = [8, 32], strides = [1, 1]} : vector<8x128xf32> to vector<8x32xf32>
    %57 = vector.extract_strided_slice %54 {offsets = [0, 32], sizes = [8, 32], strides = [1, 1]} : vector<8x128xf32> to vector<8x32xf32>
    %58 = vector.extract_strided_slice %55 {offsets = [0, 64], sizes = [8, 32], strides = [1, 1]} : vector<8x128xf32> to vector<8x32xf32>
    %59 = vector.extract_strided_slice %54 {offsets = [0, 96], sizes = [8, 32], strides = [1, 1]} : vector<8x128xf32> to vector<8x32xf32>
    %60 = arith.mulf %57, %25 : vector<8x32xf32>
    %61 = arith.mulf %56, %58 : vector<8x32xf32>
    %62 = arith.addf %60, %61 : vector<8x32xf32>
    %63 = math.tanh %62 : vector<8x32xf32>
    %64 = arith.mulf %59, %63 : vector<8x32xf32>
    %65 = tpu.concatenate %64, %46 in 1 : vector<8x32xf32>, vector<8x32xf32> -> vector<8x64xf32>
    %cst_18 = arith.constant dense<0.000000e+00> : vector<8x128xf32>
    %66 = tpu.matmul %65, %3, %cst_18 {dimension_numbers = #tpu.dot_dimension_numbers<[1], [0], [0], [1], [0, 0, 1, 1], [], []>} : vector<8x64xf32>, vector<64x128xf32>, vector<8x128xf32> -> vector<8x128xf32>
    %67 = vector.broadcast %4 : vector<1x128xf32> to vector<8x128xf32>
    %68 = arith.addf %66, %67 : vector<8x128xf32>
    %69 = arith.negf %68 : vector<8x128xf32>
    %70 = math.exp %69 : vector<8x128xf32>
    %cst_19 = arith.constant 1.000000e+00 : f32
    %71 = vector.broadcast %cst_19 : f32 to vector<8x128xf32>
    %72 = arith.addf %71, %70 : vector<8x128xf32>
    %73 = arith.divf %71, %72 : vector<8x128xf32>
    %74 = math.tanh %68 : vector<8x128xf32>
    %75 = vector.extract_strided_slice %73 {offsets = [0, 0], sizes = [8, 32], strides = [1, 1]} : vector<8x128xf32> to vector<8x32xf32>
    %76 = vector.extract_strided_slice %73 {offsets = [0, 32], sizes = [8, 32], strides = [1, 1]} : vector<8x128xf32> to vector<8x32xf32>
    %77 = vector.extract_strided_slice %74 {offsets = [0, 64], sizes = [8, 32], strides = [1, 1]} : vector<8x128xf32> to vector<8x32xf32>
    %78 = vector.extract_strided_slice %73 {offsets = [0, 96], sizes = [8, 32], strides = [1, 1]} : vector<8x128xf32> to vector<8x32xf32>
    %79 = arith.mulf %76, %44 : vector<8x32xf32>
    %80 = arith.mulf %75, %77 : vector<8x32xf32>
    %81 = arith.addf %79, %80 : vector<8x32xf32>
    %82 = math.tanh %81 : vector<8x32xf32>
    %83 = arith.mulf %78, %82 : vector<8x32xf32>
    %84 = vector.extract_strided_slice %8 {offsets = [16, 0], sizes = [8, 128], strides = [1, 1]} : vector<64x128xf32> to vector<8x128xf32>
    %cst_20 = arith.constant dense<0.000000e+00> : vector<8x128xf32>
    %85 = tpu.matmul %64, %1, %cst_20 {dimension_numbers = #tpu.dot_dimension_numbers<[1], [0], [0], [1], [0, 0, 1, 1], [], []>} : vector<8x32xf32>, vector<32x128xf32>, vector<8x128xf32> -> vector<8x128xf32>
    %86 = arith.addf %84, %85 : vector<8x128xf32>
    %87 = arith.negf %86 : vector<8x128xf32>
    %88 = math.exp %87 : vector<8x128xf32>
    %cst_21 = arith.constant 1.000000e+00 : f32
    %89 = vector.broadcast %cst_21 : f32 to vector<8x128xf32>
    %90 = arith.addf %89, %88 : vector<8x128xf32>
    %91 = arith.divf %89, %90 : vector<8x128xf32>
    %92 = math.tanh %86 : vector<8x128xf32>
    %93 = vector.extract_strided_slice %91 {offsets = [0, 0], sizes = [8, 32], strides = [1, 1]} : vector<8x128xf32> to vector<8x32xf32>
    %94 = vector.extract_strided_slice %91 {offsets = [0, 32], sizes = [8, 32], strides = [1, 1]} : vector<8x128xf32> to vector<8x32xf32>
    %95 = vector.extract_strided_slice %92 {offsets = [0, 64], sizes = [8, 32], strides = [1, 1]} : vector<8x128xf32> to vector<8x32xf32>
    %96 = vector.extract_strided_slice %91 {offsets = [0, 96], sizes = [8, 32], strides = [1, 1]} : vector<8x128xf32> to vector<8x32xf32>
    %97 = arith.mulf %94, %62 : vector<8x32xf32>
    %98 = arith.mulf %93, %95 : vector<8x32xf32>
    %99 = arith.addf %97, %98 : vector<8x32xf32>
    %100 = math.tanh %99 : vector<8x32xf32>
    %101 = arith.mulf %96, %100 : vector<8x32xf32>
    %102 = tpu.concatenate %101, %83 in 1 : vector<8x32xf32>, vector<8x32xf32> -> vector<8x64xf32>
    %cst_22 = arith.constant dense<0.000000e+00> : vector<8x128xf32>
    %103 = tpu.matmul %102, %3, %cst_22 {dimension_numbers = #tpu.dot_dimension_numbers<[1], [0], [0], [1], [0, 0, 1, 1], [], []>} : vector<8x64xf32>, vector<64x128xf32>, vector<8x128xf32> -> vector<8x128xf32>
    %104 = vector.broadcast %4 : vector<1x128xf32> to vector<8x128xf32>
    %105 = arith.addf %103, %104 : vector<8x128xf32>
    %106 = arith.negf %105 : vector<8x128xf32>
    %107 = math.exp %106 : vector<8x128xf32>
    %cst_23 = arith.constant 1.000000e+00 : f32
    %108 = vector.broadcast %cst_23 : f32 to vector<8x128xf32>
    %109 = arith.addf %108, %107 : vector<8x128xf32>
    %110 = arith.divf %108, %109 : vector<8x128xf32>
    %111 = math.tanh %105 : vector<8x128xf32>
    %112 = vector.extract_strided_slice %110 {offsets = [0, 0], sizes = [8, 32], strides = [1, 1]} : vector<8x128xf32> to vector<8x32xf32>
    %113 = vector.extract_strided_slice %110 {offsets = [0, 32], sizes = [8, 32], strides = [1, 1]} : vector<8x128xf32> to vector<8x32xf32>
    %114 = vector.extract_strided_slice %111 {offsets = [0, 64], sizes = [8, 32], strides = [1, 1]} : vector<8x128xf32> to vector<8x32xf32>
    %115 = vector.extract_strided_slice %110 {offsets = [0, 96], sizes = [8, 32], strides = [1, 1]} : vector<8x128xf32> to vector<8x32xf32>
    %116 = arith.mulf %113, %81 : vector<8x32xf32>
    %117 = arith.mulf %112, %114 : vector<8x32xf32>
    %118 = arith.addf %116, %117 : vector<8x32xf32>
    %119 = math.tanh %118 : vector<8x32xf32>
    %120 = arith.mulf %115, %119 : vector<8x32xf32>
    %121 = vector.extract_strided_slice %8 {offsets = [24, 0], sizes = [8, 128], strides = [1, 1]} : vector<64x128xf32> to vector<8x128xf32>
    %cst_24 = arith.constant dense<0.000000e+00> : vector<8x128xf32>
    %122 = tpu.matmul %101, %1, %cst_24 {dimension_numbers = #tpu.dot_dimension_numbers<[1], [0], [0], [1], [0, 0, 1, 1], [], []>} : vector<8x32xf32>, vector<32x128xf32>, vector<8x128xf32> -> vector<8x128xf32>
    %123 = arith.addf %121, %122 : vector<8x128xf32>
    %124 = arith.negf %123 : vector<8x128xf32>
    %125 = math.exp %124 : vector<8x128xf32>
    %cst_25 = arith.constant 1.000000e+00 : f32
    %126 = vector.broadcast %cst_25 : f32 to vector<8x128xf32>
    %127 = arith.addf %126, %125 : vector<8x128xf32>
    %128 = arith.divf %126, %127 : vector<8x128xf32>
    %129 = math.tanh %123 : vector<8x128xf32>
    %130 = vector.extract_strided_slice %128 {offsets = [0, 0], sizes = [8, 32], strides = [1, 1]} : vector<8x128xf32> to vector<8x32xf32>
    %131 = vector.extract_strided_slice %128 {offsets = [0, 32], sizes = [8, 32], strides = [1, 1]} : vector<8x128xf32> to vector<8x32xf32>
    %132 = vector.extract_strided_slice %129 {offsets = [0, 64], sizes = [8, 32], strides = [1, 1]} : vector<8x128xf32> to vector<8x32xf32>
    %133 = vector.extract_strided_slice %128 {offsets = [0, 96], sizes = [8, 32], strides = [1, 1]} : vector<8x128xf32> to vector<8x32xf32>
    %134 = arith.mulf %131, %99 : vector<8x32xf32>
    %135 = arith.mulf %130, %132 : vector<8x32xf32>
    %136 = arith.addf %134, %135 : vector<8x32xf32>
    %137 = math.tanh %136 : vector<8x32xf32>
    %138 = arith.mulf %133, %137 : vector<8x32xf32>
    %139 = tpu.concatenate %138, %120 in 1 : vector<8x32xf32>, vector<8x32xf32> -> vector<8x64xf32>
    %cst_26 = arith.constant dense<0.000000e+00> : vector<8x128xf32>
    %140 = tpu.matmul %139, %3, %cst_26 {dimension_numbers = #tpu.dot_dimension_numbers<[1], [0], [0], [1], [0, 0, 1, 1], [], []>} : vector<8x64xf32>, vector<64x128xf32>, vector<8x128xf32> -> vector<8x128xf32>
    %141 = vector.broadcast %4 : vector<1x128xf32> to vector<8x128xf32>
    %142 = arith.addf %140, %141 : vector<8x128xf32>
    %143 = arith.negf %142 : vector<8x128xf32>
    %144 = math.exp %143 : vector<8x128xf32>
    %cst_27 = arith.constant 1.000000e+00 : f32
    %145 = vector.broadcast %cst_27 : f32 to vector<8x128xf32>
    %146 = arith.addf %145, %144 : vector<8x128xf32>
    %147 = arith.divf %145, %146 : vector<8x128xf32>
    %148 = math.tanh %142 : vector<8x128xf32>
    %149 = vector.extract_strided_slice %147 {offsets = [0, 0], sizes = [8, 32], strides = [1, 1]} : vector<8x128xf32> to vector<8x32xf32>
    %150 = vector.extract_strided_slice %147 {offsets = [0, 32], sizes = [8, 32], strides = [1, 1]} : vector<8x128xf32> to vector<8x32xf32>
    %151 = vector.extract_strided_slice %148 {offsets = [0, 64], sizes = [8, 32], strides = [1, 1]} : vector<8x128xf32> to vector<8x32xf32>
    %152 = vector.extract_strided_slice %147 {offsets = [0, 96], sizes = [8, 32], strides = [1, 1]} : vector<8x128xf32> to vector<8x32xf32>
    %153 = arith.mulf %150, %118 : vector<8x32xf32>
    %154 = arith.mulf %149, %151 : vector<8x32xf32>
    %155 = arith.addf %153, %154 : vector<8x32xf32>
    %156 = math.tanh %155 : vector<8x32xf32>
    %157 = arith.mulf %152, %156 : vector<8x32xf32>
    %158 = vector.extract_strided_slice %8 {offsets = [32, 0], sizes = [8, 128], strides = [1, 1]} : vector<64x128xf32> to vector<8x128xf32>
    %cst_28 = arith.constant dense<0.000000e+00> : vector<8x128xf32>
    %159 = tpu.matmul %138, %1, %cst_28 {dimension_numbers = #tpu.dot_dimension_numbers<[1], [0], [0], [1], [0, 0, 1, 1], [], []>} : vector<8x32xf32>, vector<32x128xf32>, vector<8x128xf32> -> vector<8x128xf32>
    %160 = arith.addf %158, %159 : vector<8x128xf32>
    %161 = arith.negf %160 : vector<8x128xf32>
    %162 = math.exp %161 : vector<8x128xf32>
    %cst_29 = arith.constant 1.000000e+00 : f32
    %163 = vector.broadcast %cst_29 : f32 to vector<8x128xf32>
    %164 = arith.addf %163, %162 : vector<8x128xf32>
    %165 = arith.divf %163, %164 : vector<8x128xf32>
    %166 = math.tanh %160 : vector<8x128xf32>
    %167 = vector.extract_strided_slice %165 {offsets = [0, 0], sizes = [8, 32], strides = [1, 1]} : vector<8x128xf32> to vector<8x32xf32>
    %168 = vector.extract_strided_slice %165 {offsets = [0, 32], sizes = [8, 32], strides = [1, 1]} : vector<8x128xf32> to vector<8x32xf32>
    %169 = vector.extract_strided_slice %166 {offsets = [0, 64], sizes = [8, 32], strides = [1, 1]} : vector<8x128xf32> to vector<8x32xf32>
    %170 = vector.extract_strided_slice %165 {offsets = [0, 96], sizes = [8, 32], strides = [1, 1]} : vector<8x128xf32> to vector<8x32xf32>
    %171 = arith.mulf %168, %136 : vector<8x32xf32>
    %172 = arith.mulf %167, %169 : vector<8x32xf32>
    %173 = arith.addf %171, %172 : vector<8x32xf32>
    %174 = math.tanh %173 : vector<8x32xf32>
    %175 = arith.mulf %170, %174 : vector<8x32xf32>
    %176 = tpu.concatenate %175, %157 in 1 : vector<8x32xf32>, vector<8x32xf32> -> vector<8x64xf32>
    %cst_30 = arith.constant dense<0.000000e+00> : vector<8x128xf32>
    %177 = tpu.matmul %176, %3, %cst_30 {dimension_numbers = #tpu.dot_dimension_numbers<[1], [0], [0], [1], [0, 0, 1, 1], [], []>} : vector<8x64xf32>, vector<64x128xf32>, vector<8x128xf32> -> vector<8x128xf32>
    %178 = vector.broadcast %4 : vector<1x128xf32> to vector<8x128xf32>
    %179 = arith.addf %177, %178 : vector<8x128xf32>
    %180 = arith.negf %179 : vector<8x128xf32>
    %181 = math.exp %180 : vector<8x128xf32>
    %cst_31 = arith.constant 1.000000e+00 : f32
    %182 = vector.broadcast %cst_31 : f32 to vector<8x128xf32>
    %183 = arith.addf %182, %181 : vector<8x128xf32>
    %184 = arith.divf %182, %183 : vector<8x128xf32>
    %185 = math.tanh %179 : vector<8x128xf32>
    %186 = vector.extract_strided_slice %184 {offsets = [0, 0], sizes = [8, 32], strides = [1, 1]} : vector<8x128xf32> to vector<8x32xf32>
    %187 = vector.extract_strided_slice %184 {offsets = [0, 32], sizes = [8, 32], strides = [1, 1]} : vector<8x128xf32> to vector<8x32xf32>
    %188 = vector.extract_strided_slice %185 {offsets = [0, 64], sizes = [8, 32], strides = [1, 1]} : vector<8x128xf32> to vector<8x32xf32>
    %189 = vector.extract_strided_slice %184 {offsets = [0, 96], sizes = [8, 32], strides = [1, 1]} : vector<8x128xf32> to vector<8x32xf32>
    %190 = arith.mulf %187, %155 : vector<8x32xf32>
    %191 = arith.mulf %186, %188 : vector<8x32xf32>
    %192 = arith.addf %190, %191 : vector<8x32xf32>
    %193 = math.tanh %192 : vector<8x32xf32>
    %194 = arith.mulf %189, %193 : vector<8x32xf32>
    %195 = vector.extract_strided_slice %8 {offsets = [40, 0], sizes = [8, 128], strides = [1, 1]} : vector<64x128xf32> to vector<8x128xf32>
    %cst_32 = arith.constant dense<0.000000e+00> : vector<8x128xf32>
    %196 = tpu.matmul %175, %1, %cst_32 {dimension_numbers = #tpu.dot_dimension_numbers<[1], [0], [0], [1], [0, 0, 1, 1], [], []>} : vector<8x32xf32>, vector<32x128xf32>, vector<8x128xf32> -> vector<8x128xf32>
    %197 = arith.addf %195, %196 : vector<8x128xf32>
    %198 = arith.negf %197 : vector<8x128xf32>
    %199 = math.exp %198 : vector<8x128xf32>
    %cst_33 = arith.constant 1.000000e+00 : f32
    %200 = vector.broadcast %cst_33 : f32 to vector<8x128xf32>
    %201 = arith.addf %200, %199 : vector<8x128xf32>
    %202 = arith.divf %200, %201 : vector<8x128xf32>
    %203 = math.tanh %197 : vector<8x128xf32>
    %204 = vector.extract_strided_slice %202 {offsets = [0, 0], sizes = [8, 32], strides = [1, 1]} : vector<8x128xf32> to vector<8x32xf32>
    %205 = vector.extract_strided_slice %202 {offsets = [0, 32], sizes = [8, 32], strides = [1, 1]} : vector<8x128xf32> to vector<8x32xf32>
    %206 = vector.extract_strided_slice %203 {offsets = [0, 64], sizes = [8, 32], strides = [1, 1]} : vector<8x128xf32> to vector<8x32xf32>
    %207 = vector.extract_strided_slice %202 {offsets = [0, 96], sizes = [8, 32], strides = [1, 1]} : vector<8x128xf32> to vector<8x32xf32>
    %208 = arith.mulf %205, %173 : vector<8x32xf32>
    %209 = arith.mulf %204, %206 : vector<8x32xf32>
    %210 = arith.addf %208, %209 : vector<8x32xf32>
    %211 = math.tanh %210 : vector<8x32xf32>
    %212 = arith.mulf %207, %211 : vector<8x32xf32>
    %213 = tpu.concatenate %212, %194 in 1 : vector<8x32xf32>, vector<8x32xf32> -> vector<8x64xf32>
    %cst_34 = arith.constant dense<0.000000e+00> : vector<8x128xf32>
    %214 = tpu.matmul %213, %3, %cst_34 {dimension_numbers = #tpu.dot_dimension_numbers<[1], [0], [0], [1], [0, 0, 1, 1], [], []>} : vector<8x64xf32>, vector<64x128xf32>, vector<8x128xf32> -> vector<8x128xf32>
    %215 = vector.broadcast %4 : vector<1x128xf32> to vector<8x128xf32>
    %216 = arith.addf %214, %215 : vector<8x128xf32>
    %217 = arith.negf %216 : vector<8x128xf32>
    %218 = math.exp %217 : vector<8x128xf32>
    %cst_35 = arith.constant 1.000000e+00 : f32
    %219 = vector.broadcast %cst_35 : f32 to vector<8x128xf32>
    %220 = arith.addf %219, %218 : vector<8x128xf32>
    %221 = arith.divf %219, %220 : vector<8x128xf32>
    %222 = math.tanh %216 : vector<8x128xf32>
    %223 = vector.extract_strided_slice %221 {offsets = [0, 0], sizes = [8, 32], strides = [1, 1]} : vector<8x128xf32> to vector<8x32xf32>
    %224 = vector.extract_strided_slice %221 {offsets = [0, 32], sizes = [8, 32], strides = [1, 1]} : vector<8x128xf32> to vector<8x32xf32>
    %225 = vector.extract_strided_slice %222 {offsets = [0, 64], sizes = [8, 32], strides = [1, 1]} : vector<8x128xf32> to vector<8x32xf32>
    %226 = vector.extract_strided_slice %221 {offsets = [0, 96], sizes = [8, 32], strides = [1, 1]} : vector<8x128xf32> to vector<8x32xf32>
    %227 = arith.mulf %224, %192 : vector<8x32xf32>
    %228 = arith.mulf %223, %225 : vector<8x32xf32>
    %229 = arith.addf %227, %228 : vector<8x32xf32>
    %230 = math.tanh %229 : vector<8x32xf32>
    %231 = arith.mulf %226, %230 : vector<8x32xf32>
    %232 = vector.extract_strided_slice %8 {offsets = [48, 0], sizes = [8, 128], strides = [1, 1]} : vector<64x128xf32> to vector<8x128xf32>
    %cst_36 = arith.constant dense<0.000000e+00> : vector<8x128xf32>
    %233 = tpu.matmul %212, %1, %cst_36 {dimension_numbers = #tpu.dot_dimension_numbers<[1], [0], [0], [1], [0, 0, 1, 1], [], []>} : vector<8x32xf32>, vector<32x128xf32>, vector<8x128xf32> -> vector<8x128xf32>
    %234 = arith.addf %232, %233 : vector<8x128xf32>
    %235 = arith.negf %234 : vector<8x128xf32>
    %236 = math.exp %235 : vector<8x128xf32>
    %cst_37 = arith.constant 1.000000e+00 : f32
    %237 = vector.broadcast %cst_37 : f32 to vector<8x128xf32>
    %238 = arith.addf %237, %236 : vector<8x128xf32>
    %239 = arith.divf %237, %238 : vector<8x128xf32>
    %240 = math.tanh %234 : vector<8x128xf32>
    %241 = vector.extract_strided_slice %239 {offsets = [0, 0], sizes = [8, 32], strides = [1, 1]} : vector<8x128xf32> to vector<8x32xf32>
    %242 = vector.extract_strided_slice %239 {offsets = [0, 32], sizes = [8, 32], strides = [1, 1]} : vector<8x128xf32> to vector<8x32xf32>
    %243 = vector.extract_strided_slice %240 {offsets = [0, 64], sizes = [8, 32], strides = [1, 1]} : vector<8x128xf32> to vector<8x32xf32>
    %244 = vector.extract_strided_slice %239 {offsets = [0, 96], sizes = [8, 32], strides = [1, 1]} : vector<8x128xf32> to vector<8x32xf32>
    %245 = arith.mulf %242, %210 : vector<8x32xf32>
    %246 = arith.mulf %241, %243 : vector<8x32xf32>
    %247 = arith.addf %245, %246 : vector<8x32xf32>
    %248 = math.tanh %247 : vector<8x32xf32>
    %249 = arith.mulf %244, %248 : vector<8x32xf32>
    %250 = tpu.concatenate %249, %231 in 1 : vector<8x32xf32>, vector<8x32xf32> -> vector<8x64xf32>
    %cst_38 = arith.constant dense<0.000000e+00> : vector<8x128xf32>
    %251 = tpu.matmul %250, %3, %cst_38 {dimension_numbers = #tpu.dot_dimension_numbers<[1], [0], [0], [1], [0, 0, 1, 1], [], []>} : vector<8x64xf32>, vector<64x128xf32>, vector<8x128xf32> -> vector<8x128xf32>
    %252 = vector.broadcast %4 : vector<1x128xf32> to vector<8x128xf32>
    %253 = arith.addf %251, %252 : vector<8x128xf32>
    %254 = arith.negf %253 : vector<8x128xf32>
    %255 = math.exp %254 : vector<8x128xf32>
    %cst_39 = arith.constant 1.000000e+00 : f32
    %256 = vector.broadcast %cst_39 : f32 to vector<8x128xf32>
    %257 = arith.addf %256, %255 : vector<8x128xf32>
    %258 = arith.divf %256, %257 : vector<8x128xf32>
    %259 = math.tanh %253 : vector<8x128xf32>
    %260 = vector.extract_strided_slice %258 {offsets = [0, 0], sizes = [8, 32], strides = [1, 1]} : vector<8x128xf32> to vector<8x32xf32>
    %261 = vector.extract_strided_slice %258 {offsets = [0, 32], sizes = [8, 32], strides = [1, 1]} : vector<8x128xf32> to vector<8x32xf32>
    %262 = vector.extract_strided_slice %259 {offsets = [0, 64], sizes = [8, 32], strides = [1, 1]} : vector<8x128xf32> to vector<8x32xf32>
    %263 = vector.extract_strided_slice %258 {offsets = [0, 96], sizes = [8, 32], strides = [1, 1]} : vector<8x128xf32> to vector<8x32xf32>
    %264 = arith.mulf %261, %229 : vector<8x32xf32>
    %265 = arith.mulf %260, %262 : vector<8x32xf32>
    %266 = arith.addf %264, %265 : vector<8x32xf32>
    %267 = math.tanh %266 : vector<8x32xf32>
    %268 = arith.mulf %263, %267 : vector<8x32xf32>
    %269 = vector.extract_strided_slice %8 {offsets = [56, 0], sizes = [8, 128], strides = [1, 1]} : vector<64x128xf32> to vector<8x128xf32>
    %cst_40 = arith.constant dense<0.000000e+00> : vector<8x128xf32>
    %270 = tpu.matmul %249, %1, %cst_40 {dimension_numbers = #tpu.dot_dimension_numbers<[1], [0], [0], [1], [0, 0, 1, 1], [], []>} : vector<8x32xf32>, vector<32x128xf32>, vector<8x128xf32> -> vector<8x128xf32>
    %271 = arith.addf %269, %270 : vector<8x128xf32>
    %272 = arith.negf %271 : vector<8x128xf32>
    %273 = math.exp %272 : vector<8x128xf32>
    %cst_41 = arith.constant 1.000000e+00 : f32
    %274 = vector.broadcast %cst_41 : f32 to vector<8x128xf32>
    %275 = arith.addf %274, %273 : vector<8x128xf32>
    %276 = arith.divf %274, %275 : vector<8x128xf32>
    %277 = math.tanh %271 : vector<8x128xf32>
    %278 = vector.extract_strided_slice %276 {offsets = [0, 0], sizes = [8, 32], strides = [1, 1]} : vector<8x128xf32> to vector<8x32xf32>
    %279 = vector.extract_strided_slice %276 {offsets = [0, 32], sizes = [8, 32], strides = [1, 1]} : vector<8x128xf32> to vector<8x32xf32>
    %280 = vector.extract_strided_slice %277 {offsets = [0, 64], sizes = [8, 32], strides = [1, 1]} : vector<8x128xf32> to vector<8x32xf32>
    %281 = vector.extract_strided_slice %276 {offsets = [0, 96], sizes = [8, 32], strides = [1, 1]} : vector<8x128xf32> to vector<8x32xf32>
    %282 = arith.mulf %279, %247 : vector<8x32xf32>
    %283 = arith.mulf %278, %280 : vector<8x32xf32>
    %284 = arith.addf %282, %283 : vector<8x32xf32>
    %285 = math.tanh %284 : vector<8x32xf32>
    %286 = arith.mulf %281, %285 : vector<8x32xf32>
    %287 = tpu.concatenate %286, %268 in 1 : vector<8x32xf32>, vector<8x32xf32> -> vector<8x64xf32>
    %cst_42 = arith.constant dense<0.000000e+00> : vector<8x128xf32>
    %288 = tpu.matmul %287, %3, %cst_42 {dimension_numbers = #tpu.dot_dimension_numbers<[1], [0], [0], [1], [0, 0, 1, 1], [], []>} : vector<8x64xf32>, vector<64x128xf32>, vector<8x128xf32> -> vector<8x128xf32>
    %289 = vector.broadcast %4 : vector<1x128xf32> to vector<8x128xf32>
    %290 = arith.addf %288, %289 : vector<8x128xf32>
    %291 = arith.negf %290 : vector<8x128xf32>
    %292 = math.exp %291 : vector<8x128xf32>
    %cst_43 = arith.constant 1.000000e+00 : f32
    %293 = vector.broadcast %cst_43 : f32 to vector<8x128xf32>
    %294 = arith.addf %293, %292 : vector<8x128xf32>
    %295 = arith.divf %293, %294 : vector<8x128xf32>
    %296 = math.tanh %290 : vector<8x128xf32>
    %297 = vector.extract_strided_slice %295 {offsets = [0, 0], sizes = [8, 32], strides = [1, 1]} : vector<8x128xf32> to vector<8x32xf32>
    %298 = vector.extract_strided_slice %295 {offsets = [0, 32], sizes = [8, 32], strides = [1, 1]} : vector<8x128xf32> to vector<8x32xf32>
    %299 = vector.extract_strided_slice %296 {offsets = [0, 64], sizes = [8, 32], strides = [1, 1]} : vector<8x128xf32> to vector<8x32xf32>
    %300 = vector.extract_strided_slice %295 {offsets = [0, 96], sizes = [8, 32], strides = [1, 1]} : vector<8x128xf32> to vector<8x32xf32>
    %301 = arith.mulf %298, %266 : vector<8x32xf32>
    %302 = arith.mulf %297, %299 : vector<8x32xf32>
    %303 = arith.addf %301, %302 : vector<8x32xf32>
    %304 = math.tanh %303 : vector<8x32xf32>
    %305 = arith.mulf %300, %304 : vector<8x32xf32>
    %c0_44 = arith.constant 0 : index
    %c0_45 = arith.constant 0 : index
    %306 = vector.load %arg6[%c0_44, %c0_45] : memref<32x128xf32, #tpu.memory_space<vmem>>, vector<32x128xf32>
    %cst_46 = arith.constant dense<0.000000e+00> : vector<8x128xf32>
    %307 = tpu.matmul %305, %306, %cst_46 {dimension_numbers = #tpu.dot_dimension_numbers<[1], [0], [0], [1], [0, 0, 1, 1], [], []>} : vector<8x32xf32>, vector<32x128xf32>, vector<8x128xf32> -> vector<8x128xf32>
    %c0_47 = arith.constant 0 : index
    %c0_48 = arith.constant 0 : index
    %308 = vector.load %arg7[%c0_47, %c0_48] : memref<1x128xf32, #tpu.memory_space<vmem>>, vector<1x128xf32>
    %309 = vector.broadcast %308 : vector<1x128xf32> to vector<8x128xf32>
    %310 = arith.addf %307, %309 : vector<8x128xf32>
    %c0_49 = arith.constant 0 : index
    %c0_50 = arith.constant 0 : index
    %311 = vector.load %arg8[%c0_49, %c0_50] : memref<8x128xf32, #tpu.memory_space<vmem>>, vector<8x128xf32>
    tpu.vector_store %arg8[%c0_49, %c0_50], %310 {strides = array<i32>} : memref<8x128xf32, #tpu.memory_space<vmem>>, vector<8x128xf32>,
    return
  }
}

</mosaic_0001>

<bundles_post_ra>
// kernel: tpu_custom_call.1
= control target key start
LH: loop header
LB: loop body
LE: loop exit
PB: predicated region body
PF: predicated region fallthrough
CT: control target
= control target key end

     0   :  { %13 = vsyncpa [#allocation3], 0  ;;  %s3190_s0 = inlined_call_operand.vmem [shape: f32[64,16], index: 0, kind: input, shape index: {}]   ;;  %s3191_s1 = inlined_call_operand.vmem [shape: f32[16,128], index: 1, kind: input, shape index: {}]   ;;  %s3192_s2 = inlined_call_operand.hbm [shape: f32[32,128], index: 2, kind: input, shape index: {}]   ;;  %s3193_s3 = inlined_call_operand.vmem [shape: f32[1,128], index: 3, kind: input, shape index: {}]   ;;  %s3194_s4 = inlined_call_operand.vmem [shape: f32[64,128], index: 4, kind: input, shape index: {}]   ;;  %s3195_s5 = inlined_call_operand.vmem [shape: f32[1,128], index: 5, kind: input, shape index: {}]   ;;  %s3196_s6 = inlined_call_operand.hbm [shape: f32[32,128], index: 6, kind: input, shape index: {}]   ;;  %s3197_s7 = inlined_call_operand.vmem [shape: f32[1,128], index: 7, kind: input, shape index: {}]   ;;  %s3198_s8 = inlined_call_operand.hbm [shape: f32[8,128], index: 8, kind: output, shape index: {}]  }
   0x1   :  { %14 = vsyncpa [#allocation6], 0 }
   0x2   :  { %15 = vsyncpa [#allocation4], 0  ;;  %s2604_s27 = smov [#allocation2]  }
   0x3   :  { %s25_s28 = sshll.u32 %s2604_s27, 4  ;;  %s26_s28 = int_to_ptr.vmem [resolvable:$true] %s25_s28 }
   0x4   :  { %s2546_s29 = scalar_lea.vmem %s26_s28, 512  ;;  %p2551_p1 = scmp.lt.s32.totalorder %s26_s28, %s26_s28 }
   0x5   :  { %p2547_p0 = scmp.ne.s32.totalorder %s26_s28, %s2546_s29  ;;  %p2552_p2 = scmp.lt.s32.totalorder %s2546_s29, %s2546_s29 }
   0x7   :  { %p2553_p3 = por %p2552_p2, %p2551_p1 }
   0x9   :  { %p2554_p4 = pnand %p2553_p3, %p2547_p0 }
   0xb   :  { %2557 = shalt.err (!%p2554_p4)
}
   0xc   :  { %s2605_s30 = smov 128   ;;  %s2606_s9 = smov 8  }
   0xd   :  { %31 = dma.hbm_to_vmem [thread:$0]  %s3192_s2, 512, %s26_s28, [#allocation3], %s2605_s30, %s2605_s30, %s2606_s9  }
   0xe   :  { %s2607_s12 = smov [#allocation5]  }
   0xf   :  { %s43_s13 = sshll.u32 %s2607_s12, 4  ;;  %s44_s13 = int_to_ptr.vmem [resolvable:$true] %s43_s13 }
  0x10   :  { %s2566_s14 = scalar_lea.vmem %s44_s13, 512  ;;  %p2571_p6 = scmp.lt.s32.totalorder %s44_s13, %s44_s13 }
  0x11   :  { %p2567_p5 = scmp.ne.s32.totalorder %s44_s13, %s2566_s14  ;;  %p2572_p7 = scmp.lt.s32.totalorder %s2566_s14, %s2566_s14 }
  0x13   :  { %p2573_p8 = por %p2572_p7, %p2571_p6 }
  0x15   :  { %p2574_p9 = pnand %p2573_p8, %p2567_p5 }
  0x17   :  { %2577 = shalt.err (!%p2574_p9)
}
  0x18   :  { %49 = dma.hbm_to_vmem [thread:$0]  %s3196_s6, 512, %s44_s13, [#allocation6], %s2605_s30, %s2605_s30, %s2606_s9  }
  0x19   :  { %2598 = dma.done.wait [#allocation3], 512  }
  0x1a   :  { %2599 = vsyncadd [#allocation3], 4294966784 }
  0x1b   :  { %2600 = dma.done.wait [#allocation6], 512  }
  0x1c   :  { %2601 = vsyncadd [#allocation6], 4294966784  ;;  %v2608_v0 = vmov 0.0   ;;  %vm2609_vm0 = vmmov 0   ;;  %v59_v1 = vld [vmem:[%s3191_s1 + $0x8] sm:$0xff]  ;;  %v2670_v2 = vld [vmem:[#allocation2 + $0x18] sm:$0xff] }
  0x1d   :  { %2136 = vmatprep.subr.mxu1 %v2608_v0  ;;  %2144 = vmatprep.mubr.msk.f32.mxu1 %vm2609_vm0, %v2608_v0  ;;  %v58_v3 = vld [vmem:[%s3191_s1] sm:$0xff]  ;;  %v2676_v4 = vld [vmem:[#allocation2 + $0x10] sm:$0xff]  ;;  %vm88_vm1 = vcmask 130048   ;;  %v75_v6 = vld [vmem:[%s3190_s0 + $0x8] sm:$0xff]  ;;  %s2610_s24 = smov 64   ;;  %s2611_s25 = smov 32  }
  0x1e   :  { %2120 = vmatprep.subr.mxu0 %v59_v1  ;;  %2137 = vmatpush3.msra.mxu1 %v2670_v2  ;;  %v74_v5 = vld [vmem:[%s3190_s0] sm:$0xff]  ;;  %v2686_v7 = vld [vmem:[#allocation2 + $0x8] sm:$0xff]  ;;  %v2725_v26 = vld [vmem:[%s3194_s4 + $0x38] sm:$0xff]  ;;  %vm218_vm2 = vcmask 261120   ;;  %vm328_vm3 = vcmask 523264   ;;  %s2612_s28 = smov [#allocation7]  }
  0x1f   :  { %2121 = vmatpush3.msra.mxu0 %v59_v1  ;;  %2138 = vmatprep.subr.mxu1 %v2608_v0  ;;  %v2691_v8 = vld [vmem:[#allocation2] sm:$0xff]  ;;  %v76_v27 = vld [vmem:[%s3190_s0 + $0x10] sm:$0xff]  ;;  %v77_v28 = vld [vmem:[%s3190_s0 + $0x18] sm:$0xff] }
  0x20   :  { %2122 = vmatprep.subr.mxu0 %v58_v3  ;;  %2139 = vmatpush3.msra.mxu1 %v2676_v4  ;;  %v2714_v10 = vld [vmem:[%s3193_s3] ss:$0 sm:$0xff]  ;;  %v2738_v29 = vld [vmem:[%s3194_s4 + $0x30] sm:$0xff]  ;;  %v2748_v31 = vld [vmem:[%s3194_s4 + $0x28] sm:$0xff] }
  0x21   :  { %2123 = vmatpush3.msra.mxu0 %v58_v3  ;;  %2124 = vmatprep.mubr.msk.f32.mxu0 %vm88_vm1, %v74_v5  ;;  %v78_v30 = vld [vmem:[%s3190_s0 + $0x20] sm:$0xff]  ;;  %v79_v32 = vld [vmem:[%s3190_s0 + $0x28] sm:$0xff]  ;;  %v80_v34 = vld [vmem:[%s3190_s0 + $0x30] sm:$0xff] }
  0x22   :  { %2140 = vmatprep.subr.mxu1 %v2608_v0  ;;  %2125 = vmatmul.mubr.msk.f32.vlgmr.msra.gmra.mxu0 %vm88_vm1, %v75_v6  ;;  %v2759_v33 = vld [vmem:[%s3194_s4 + $0x20] sm:$0xff]  ;;  %v2770_v35 = vld [vmem:[%s3194_s4 + $0x18] sm:$0xff]  ;;  %v2781_v37 = vld [vmem:[%s3194_s4 + $0x10] sm:$0xff] }
  0x23   :  { %2141 = vmatpush3.msra.mxu1 %v2686_v7  ;;  %2147 = vmatprep.subr.mxu0 %v2608_v0  ;;  %v81_v36 = vld [vmem:[%s3190_s0 + $0x38] sm:$0xff]  ;;  %v2789_v39 = vld [vmem:[%s3194_s4 + $0x8] sm:$0xff]  ;;  %v2797_v40 = vld [vmem:[%s3194_s4] sm:$0xff]  ;;  %s1940_s0 = sshll.u32 %s2612_s28, 4  ;;  %s1941_s0 = int_to_ptr.vmem [resolvable:$true] %s1940_s0 }
  0x24   :  { %2142 = vmatprep.subr.mxu1 %v2608_v0  ;;  %2148 = vmatpush3.msra.mxu0 %v2725_v26  ;;  %v2854_v52 = vld [vmem:[%s3195_s5] ss:$0 sm:$0xff]  ;;  %s2578_s29 = scalar_lea.vmem %s1941_s0, 128  ;;  %p2583_p11 = scmp.lt.s32.totalorder %s1941_s0, %s1941_s0 }
  0x25   :  { %2143 = vmatpush3.msra.mxu1 %v2691_v8  ;;  %2127 = vmatprep.mubr.msk.f32.mxu0 %vm88_vm1, %v76_v27  ;;  %p2579_p10 = scmp.ne.s32.totalorder %s1941_s0, %s2578_s29  ;;  %p2584_p12 = scmp.lt.s32.totalorder %s2578_s29, %s2578_s29 }
  0x26   :  { %2145 = vmatmul.mubr.f32.vlgmr.msra.gmra.mxu1 %v2608_v0  ;;  %2166 = vmatprep.subr.mxu1 %v2608_v0 }
  0x27   :  { %2167 = vmatpush3.msra.mxu1 %v2670_v2  ;;  %2174 = vmatprep.mubr.msk.f32.mxu1 %vm2609_vm0, %v2608_v0  ;;  %p2585_p13 = por %p2584_p12, %p2583_p11 }
  0x28   :  { %2168 = vmatprep.subr.mxu1 %v2608_v0  ;;  %2149 = vmatprep.subr.mxu0 %v2608_v0 }
  0x29   :  { %2169 = vmatpush3.msra.mxu1 %v2676_v4  ;;  %2128 = vmatmul.mubr.msk.f32.gmra.mxu0 %vm88_vm1, %v77_v28  ;;  %p2586_p0 = pnand %p2585_p13, %p2579_p10 }
  0x2a   :  { %2170 = vmatprep.subr.mxu1 %v2608_v0  ;;  %2150 = vmatpush3.msra.mxu0 %v2738_v29 }
  0x2b   :  { %2171 = vmatpush3.msra.mxu1 %v2686_v7  ;;  %2130 = vmatprep.mubr.msk.f32.mxu0 %vm88_vm1, %v78_v30 }
  0x2c   :  { %2172 = vmatprep.subr.mxu1 %v2608_v0  ;;  %2151 = vmatprep.subr.mxu0 %v2608_v0 }
  0x2d   :  { %2173 = vmatpush3.msra.mxu1 %v2691_v8  ;;  %2152 = vmatpush3.msra.mxu0 %v2748_v31 }
  0x2e   :  { %2177 = vmatprep.subr.mxu1 %v2608_v0  ;;  %2153 = vmatprep.subr.mxu0 %v2608_v0 }
  0x2f   :  { %2131 = vmatmul.mubr.msk.f32.gmra.mxu0 %vm88_vm1, %v79_v32 }
  0x30   :  { %2154 = vmatpush3.msra.mxu0 %v2759_v33  ;;  %2133 = vmatprep.mubr.msk.f32.mxu0 %vm88_vm1, %v80_v34 }
  0x31   :  { %2155 = vmatprep.subr.mxu0 %v2608_v0 }
  0x32   :  { %2156 = vmatpush3.msra.mxu0 %v2770_v35 }
  0x33   :  { %2157 = vmatprep.subr.mxu0 %v2608_v0  ;;  %2134 = vmatmul.mubr.msk.f32.gmra.mxu0 %vm88_vm1, %v81_v36 }
  0x34   :  { %2158 = vmatpush3.msra.mxu0 %v2781_v37  ;;  %2163 = vmatprep.mubr.msk.f32.mxu0 %vm2609_vm0, %v2608_v0 }
  0x35   :  { %2159 = vmatprep.subr.mxu0 %v2608_v0 }
  0x36   :  { %2160 = vmatpush3.msra.mxu0 %v2789_v39 }
  0x37   :  { %2161 = vmatprep.subr.mxu0 %v2608_v0 }
  0x38   :  { %2162 = vmatpush3.msra.mxu0 %v2797_v40 }
  0x39   :  { %2196 = vmatprep.subr.mxu0 %v2608_v0 }
  0xe2   :  { %v2709_v9 = vpop.f32.mrf.mxu0 }
  0xe3   :  { %v185_v50 = vadd.f32 %v2709_v9, %v2714_v10 }
  0xe4   :  { %v179_v11 = vpop.f32.mrf.mxu0 }
  0xe5   :  { %v180_v12 = vadd.f32 %v2714_v10, %v179_v11 }
  0xe6   :  { %v288_v13 = vpop.f32.mrf.mxu1 }
  0xe7   :  { %v292_v14 = vadd.f32 %v288_v13, %v180_v12 }
  0xe8   :  { %v2146_v15 = vpop.f32.mrf.mxu1 }
  0xe9   :  { %2396 = vtanh.f32 %v292_v14  ;;  %v1959_v17 = vmul.f32 -1.442695, %v292_v14  ;;  %v2837_v45 = vpop.f32.mrf.mxu0 }
  0xeb   :  { %2398 = vpow2.f32 %v1959_v17  ;;  %v2839_v46 = vpop.f32.mrf.mxu0 }
  0xec   :  { %v190_v34 = vadd.f32 %v2714_v10, %v2839_v46 }
  0xef   :  { %v2841_v47 = vpop.f32.mrf.mxu0 }
  0xf1   :  { %v2843_v48 = vpop.f32.mrf.mxu0 }
  0xf3   :  { %v2845_v49 = vpop.f32.mrf.mxu0 }
  0xf5   :  { %v2849_v51 = vpop.f32.mrf.mxu0 }
  0xf6   :  { %v2397_v16 = vpop.eup %2396 }
  0xf7   :  { %302 = vrot.lane.b32.xlu0 %v2397_v16, %s2610_s24 }
  0xf8   :  { %v2399_v18 = vpop.eup %2398 }
  0xf9   :  { %v296_v19 = vadd.f32 1.0, %v2399_v18 }
  0xfb   :  { %2400 = vrcp.f32 %v296_v19 }
 0x108   :  { %v2401_v20 = vpop.eup %2400 }
 0x109   :  { %v300_v23 = vmul.f32 0.0, %v2401_v20 }
 0x169   :  { %v303_v21 = vpop.permute.xlu0 %302 }
 0x16a   :  { %v305_v22 = vmul.f32 %v2401_v20, %v303_v21 }
 0x16c   :  { %307 = vrot.lane.b32.xlu0 %v305_v22, %s2611_s25 }
 0x1de   :  { %v308_v24 = vpop.permute.xlu0 %307 }
 0x1df   :  { %v2719_v25 = vadd.f32 %v308_v24, %v300_v23 }
 0x1e1   :  { %2402 = vtanh.f32 %v2719_v25 }
 0x1ee   :  { %v2403_v38 = vpop.eup %2402 }
 0x1ef   :  { %313 = vrot.lane.b32.xlu1 %v2403_v38, %s2610_s24 }
 0x261   :  { %v314_v41 = vpop.permute.xlu1 %313 }
 0x262   :  { %v316_v42 = vmul.f32 %v2401_v20, %v314_v41 }
 0x264   :  { %318 = vrot.lane.b32.xlu1 %v316_v42, %s2611_s25 }
 0x2d6   :  { %v319_v43 = vpop.permute.xlu1 %318 }
 0x2d7   :  { %v321_v44 = vsel %vm218_vm2, %v319_v43, 0.0  ;;  %2175 = vmatmul.mubr.msk.f32.vlgmr.msra.gmra.mxu1 %vm218_vm2, %v319_v43 }
 0x2d8   :  { %2164 = vmatmul.mubr.msk.f32.vlgmr.msra.gmra.mxu0 %vm328_vm3, %v321_v44  ;;  %2178 = vmatpush3.msra.mxu1 %v2725_v26 }
 0x2d9   :  { %2179 = vmatprep.subr.mxu1 %v2608_v0  ;;  %2197 = vmatpush3.msra.mxu0 %v2670_v2 }
 0x2da   :  { %2180 = vmatpush3.msra.mxu1 %v2738_v29  ;;  %2198 = vmatprep.subr.mxu0 %v2608_v0 }
 0x2db   :  { %2181 = vmatprep.subr.mxu1 %v2608_v0  ;;  %2199 = vmatpush3.msra.mxu0 %v2676_v4 }
 0x2dc   :  { %2182 = vmatpush3.msra.mxu1 %v2748_v31  ;;  %2200 = vmatprep.subr.mxu0 %v2608_v0 }
 0x2dd   :  { %2183 = vmatprep.subr.mxu1 %v2608_v0  ;;  %2201 = vmatpush3.msra.mxu0 %v2686_v7 }
 0x2de   :  { %2184 = vmatpush3.msra.mxu1 %v2759_v33  ;;  %2202 = vmatprep.subr.mxu0 %v2608_v0 }
 0x2df   :  { %2185 = vmatprep.subr.mxu1 %v2608_v0  ;;  %2203 = vmatpush3.msra.mxu0 %v2691_v8 }
 0x2e0   :  { %2186 = vmatpush3.msra.mxu1 %v2770_v35  ;;  %2204 = vmatprep.mubr.msk.f32.mxu0 %vm2609_vm0, %v2608_v0 }
 0x2e1   :  { %2187 = vmatprep.subr.mxu1 %v2608_v0  ;;  %2193 = vmatprep.mubr.msk.f32.mxu1 %vm2609_vm0, %v2608_v0 }
 0x2e2   :  { %2188 = vmatpush3.msra.mxu1 %v2781_v37  ;;  %2207 = vmatprep.subr.mxu0 %v2608_v0 }
 0x2e3   :  { %2189 = vmatprep.subr.mxu1 %v2608_v0 }
 0x2e4   :  { %2190 = vmatpush3.msra.mxu1 %v2789_v39 }
 0x2e5   :  { %2191 = vmatprep.subr.mxu1 %v2608_v0 }
 0x2e6   :  { %2192 = vmatpush3.msra.mxu1 %v2797_v40 }
 0x2e7   :  { %2226 = vmatprep.subr.mxu1 %v2608_v0 }
 0x397   :  { %v494_v53 = vpop.f32.mrf.mxu1 }
 0x398   :  { %v498_v54 = vadd.f32 %v494_v53, %v185_v50  ;;  %v398_v55 = vpop.f32.mrf.mxu0 }
 0x399   :  { %v399_v56 = vadd.f32 %v2854_v52, %v398_v55  ;;  %v2176_v57 = vpop.f32.mrf.mxu1 }
 0x39a   :  { %2404 = vtanh.f32 %v498_v54  ;;  %v2165_v58 = vpop.f32.mrf.mxu0  ;;  %v1964_v61 = vmul.f32 -1.442695, %v498_v54 }
 0x39b   :  { %2406 = vtanh.f32 %v399_v56  ;;  %v1962_v62 = vmul.f32 -1.442695, %v399_v56 }
 0x39c   :  { %2408 = vpow2.f32 %v1964_v61 }
 0x39d   :  { %2410 = vpow2.f32 %v1962_v62 }
 0x3a7   :  { %v2405_v59 = vpop.eup %2404 }
 0x3a8   :  { %v2407_v60 = vpop.eup %2406  ;;  %508 = vrot.lane.b32.xlu1 %v2405_v59, %s2610_s24 }
 0x3a9   :  { %411 = vrot.lane.b32.xlu0 %v2407_v60, %s2610_s24  ;;  %v2409_v63 = vpop.eup %2408 }
 0x3aa   :  { %v2411_v1 = vpop.eup %2410  ;;  %v502_v3 = vadd.f32 1.0, %v2409_v63 }
 0x3ab   :  { %v405_v5 = vadd.f32 1.0, %v2411_v1 }
 0x3ac   :  { %2412 = vrcp.f32 %v502_v3 }
 0x3ad   :  { %2414 = vrcp.f32 %v405_v5 }
 0x3b9   :  { %v2413_v6 = vpop.eup %2412 }
 0x3ba   :  { %v2415_v11 = vpop.eup %2414  ;;  %v506_v15 = vmul.f32 %v2413_v6, %v2719_v25 }
 0x3bb   :  { %v409_v17 = vmul.f32 0.0, %v2415_v11 }
 0x41a   :  { %v509_v9 = vpop.permute.xlu1 %508 }
 0x41b   :  { %v511_v12 = vmul.f32 %v2413_v6, %v509_v9  ;;  %v412_v13 = vpop.permute.xlu0 %411 }
 0x41c   :  { %v414_v14 = vmul.f32 %v2415_v11, %v412_v13 }
 0x41d   :  { %513 = vrot.lane.b32.xlu1 %v511_v12, %s2611_s25 }
 0x41e   :  { %416 = vrot.lane.b32.xlu0 %v414_v14, %s2611_s25 }
 0x48f   :  { %v514_v16 = vpop.permute.xlu1 %513 }
 0x490   :  { %v2862_v18 = vadd.f32 %v514_v16, %v506_v15  ;;  %v417_v19 = vpop.permute.xlu0 %416 }
 0x491   :  { %v2864_v20 = vadd.f32 %v417_v19, %v409_v17 }
 0x492   :  { %2416 = vtanh.f32 %v2862_v18 }
 0x493   :  { %2418 = vtanh.f32 %v2864_v20 }
 0x49f   :  { %v2417_v21 = vpop.eup %2416 }
 0x4a0   :  { %v2419_v22 = vpop.eup %2418  ;;  %519 = vrot.lane.b32.xlu1 %v2417_v21, %s2610_s24 }
 0x4a1   :  { %422 = vrot.lane.b32.xlu0 %v2419_v22, %s2610_s24  ;;  %v195_v22 = vadd.f32 %v2837_v45, %v2714_v10 }
 0x512   :  { %v520_v23 = vpop.permute.xlu1 %519 }
 0x513   :  { %v522_v24 = vmul.f32 %v2413_v6, %v520_v23  ;;  %v423_v25 = vpop.permute.xlu0 %422 }
 0x514   :  { %v425_v27 = vmul.f32 %v2415_v11, %v423_v25 }
 0x515   :  { %524 = vrot.lane.b32.xlu0 %v522_v24, %s2611_s25 }
 0x516   :  { %528 = vrot.lane.b32.xlu1 %v425_v27, %s2610_s24 }
 0x587   :  { %v525_v28 = vpop.permute.xlu0 %524 }
 0x588   :  { %v529_v30 = vpop.permute.xlu1 %528  ;;  %2205 = vmatmul.mubr.msk.f32.vlgmr.msra.gmra.mxu0 %vm218_vm2, %v525_v28 }
 0x589   :  { %v531_v32 = vsel %vm218_vm2, %v525_v28, %v529_v30  ;;  %2208 = vmatpush3.msra.mxu0 %v2725_v26  ;;  %2223 = vmatprep.mubr.msk.f32.mxu0 %vm2609_vm0, %v2608_v0 }
 0x58a   :  { %2194 = vmatmul.mubr.msk.f32.vlgmr.msra.gmra.mxu1 %vm328_vm3, %v531_v32  ;;  %2209 = vmatprep.subr.mxu0 %v2608_v0 }
 0x58b   :  { %2210 = vmatpush3.msra.mxu0 %v2738_v29  ;;  %2227 = vmatpush3.msra.mxu1 %v2670_v2 }
 0x58c   :  { %2211 = vmatprep.subr.mxu0 %v2608_v0  ;;  %2228 = vmatprep.subr.mxu1 %v2608_v0 }
 0x58d   :  { %2212 = vmatpush3.msra.mxu0 %v2748_v31  ;;  %2229 = vmatpush3.msra.mxu1 %v2676_v4 }
 0x58e   :  { %2213 = vmatprep.subr.mxu0 %v2608_v0  ;;  %2230 = vmatprep.subr.mxu1 %v2608_v0 }
 0x58f   :  { %2214 = vmatpush3.msra.mxu0 %v2759_v33  ;;  %2231 = vmatpush3.msra.mxu1 %v2686_v7 }
 0x590   :  { %2215 = vmatprep.subr.mxu0 %v2608_v0  ;;  %2232 = vmatprep.subr.mxu1 %v2608_v0 }
 0x591   :  { %2216 = vmatpush3.msra.mxu0 %v2770_v35  ;;  %2233 = vmatpush3.msra.mxu1 %v2691_v8 }
 0x592   :  { %2217 = vmatprep.subr.mxu0 %v2608_v0  ;;  %2234 = vmatprep.mubr.msk.f32.mxu1 %vm2609_vm0, %v2608_v0 }
 0x593   :  { %2218 = vmatpush3.msra.mxu0 %v2781_v37  ;;  %2237 = vmatprep.subr.mxu1 %v2608_v0 }
 0x594   :  { %2219 = vmatprep.subr.mxu0 %v2608_v0 }
 0x595   :  { %2220 = vmatpush3.msra.mxu0 %v2789_v39 }
 0x596   :  { %2221 = vmatprep.subr.mxu0 %v2608_v0 }
 0x597   :  { %2222 = vmatpush3.msra.mxu0 %v2797_v40 }
 0x598   :  { %2256 = vmatprep.subr.mxu0 %v2608_v0 }
 0x648   :  { %v697_v36 = vpop.f32.mrf.mxu0 }
 0x649   :  { %v701_v38 = vadd.f32 %v697_v36, %v190_v34 }
 0x64a   :  { %v601_v41 = vpop.f32.mrf.mxu1  ;;  %v2206_v42 = vpop.f32.mrf.mxu0 }
 0x64b   :  { %2420 = vtanh.f32 %v701_v38  ;;  %v602_v43 = vadd.f32 %v2854_v52, %v601_v41  ;;  %v1968_v54 = vmul.f32 -1.442695, %v701_v38 }
 0x64c   :  { %v2195_v44 = vpop.f32.mrf.mxu1 }
 0x64d   :  { %2422 = vtanh.f32 %v602_v43  ;;  %v1966_v55 = vmul.f32 -1.442695, %v602_v43 }
 0x64e   :  { %2424 = vpow2.f32 %v1968_v54 }
 0x64f   :  { %2426 = vpow2.f32 %v1966_v55 }
 0x658   :  { %v2421_v50 = vpop.eup %2420 }
 0x659   :  { %711 = vrot.lane.b32.xlu1 %v2421_v50, %s2610_s24 }
 0x65a   :  { %v2423_v53 = vpop.eup %2422 }
 0x65b   :  { %614 = vrot.lane.b32.xlu0 %v2423_v53, %s2610_s24  ;;  %v2425_v46 = vpop.eup %2424 }
 0x65c   :  { %v2427_v56 = vpop.eup %2426  ;;  %v705_v57 = vadd.f32 1.0, %v2425_v46 }
 0x65d   :  { %v608_v58 = vadd.f32 1.0, %v2427_v56 }
 0x65e   :  { %2428 = vrcp.f32 %v705_v57 }
 0x65f   :  { %2430 = vrcp.f32 %v608_v58 }
 0x66b   :  { %v2429_v59 = vpop.eup %2428 }
 0x66c   :  { %v2431_v62 = vpop.eup %2430  ;;  %v709_v3 = vmul.f32 %v2429_v59, %v2862_v18 }
 0x66d   :  { %v612_v9 = vmul.f32 %v2431_v62, %v2864_v20 }
 0x6cb   :  { %v712_v60 = vpop.permute.xlu1 %711 }
 0x6cc   :  { %v714_v61 = vmul.f32 %v2429_v59, %v712_v60 }
 0x6cd   :  { %v615_v63 = vpop.permute.xlu0 %614 }
 0x6ce   :  { %716 = vrot.lane.b32.xlu1 %v714_v61, %s2611_s25  ;;  %v617_v1 = vmul.f32 %v2431_v62, %v615_v63 }
 0x6d0   :  { %619 = vrot.lane.b32.xlu0 %v617_v1, %s2611_s25 }
 0x740   :  { %v717_v5 = vpop.permute.xlu1 %716 }
 0x741   :  { %v2911_v6 = vadd.f32 %v717_v5, %v709_v3 }
 0x742   :  { %v620_v11 = vpop.permute.xlu0 %619 }
 0x743   :  { %2432 = vtanh.f32 %v2911_v6  ;;  %v2915_v12 = vadd.f32 %v620_v11, %v612_v9 }
 0x745   :  { %2434 = vtanh.f32 %v2915_v12 }
 0x750   :  { %v2433_v13 = vpop.eup %2432 }
 0x751   :  { %722 = vrot.lane.b32.xlu1 %v2433_v13, %s2610_s24  ;;  %v200_v13 = vadd.f32 %v2714_v10, %v2843_v48 }
 0x752   :  { %v2435_v14 = vpop.eup %2434 }
 0x753   :  { %625 = vrot.lane.b32.xlu0 %v2435_v14, %s2610_s24 }
 0x7c3   :  { %v723_v15 = vpop.permute.xlu1 %722 }
 0x7c4   :  { %v725_v16 = vmul.f32 %v2429_v59, %v723_v15 }
 0x7c5   :  { %v626_v17 = vpop.permute.xlu0 %625 }
 0x7c6   :  { %727 = vrot.lane.b32.xlu0 %v725_v16, %s2611_s25  ;;  %v628_v18 = vmul.f32 %v2431_v62, %v626_v17 }
 0x7c8   :  { %731 = vrot.lane.b32.xlu1 %v628_v18, %s2610_s24 }
 0x838   :  { %v728_v19 = vpop.permute.xlu0 %727 }
 0x839   :  { %2235 = vmatmul.mubr.msk.f32.vlgmr.msra.gmra.mxu1 %vm218_vm2, %v728_v19 }
 0x83a   :  { %2238 = vmatpush3.msra.mxu1 %v2725_v26  ;;  %2253 = vmatprep.mubr.msk.f32.mxu1 %vm2609_vm0, %v2608_v0  ;;  %v732_v20 = vpop.permute.xlu1 %731 }
 0x83b   :  { %2239 = vmatprep.subr.mxu1 %v2608_v0  ;;  %v734_v21 = vsel %vm218_vm2, %v728_v19, %v732_v20 }
 0x83c   :  { %2240 = vmatpush3.msra.mxu1 %v2738_v29  ;;  %2224 = vmatmul.mubr.msk.f32.vlgmr.msra.gmra.mxu0 %vm328_vm3, %v734_v21 }
 0x83d   :  { %2241 = vmatprep.subr.mxu1 %v2608_v0  ;;  %2257 = vmatpush3.msra.mxu0 %v2670_v2 }
 0x83e   :  { %2242 = vmatpush3.msra.mxu1 %v2748_v31  ;;  %2258 = vmatprep.subr.mxu0 %v2608_v0 }
 0x83f   :  { %2243 = vmatprep.subr.mxu1 %v2608_v0  ;;  %2259 = vmatpush3.msra.mxu0 %v2676_v4 }
 0x840   :  { %2244 = vmatpush3.msra.mxu1 %v2759_v33  ;;  %2260 = vmatprep.subr.mxu0 %v2608_v0 }
 0x841   :  { %2245 = vmatprep.subr.mxu1 %v2608_v0  ;;  %2261 = vmatpush3.msra.mxu0 %v2686_v7 }
 0x842   :  { %2246 = vmatpush3.msra.mxu1 %v2770_v35  ;;  %2262 = vmatprep.subr.mxu0 %v2608_v0 }
 0x843   :  { %2247 = vmatprep.subr.mxu1 %v2608_v0  ;;  %2263 = vmatpush3.msra.mxu0 %v2691_v8 }
 0x844   :  { %2248 = vmatpush3.msra.mxu1 %v2781_v37  ;;  %2264 = vmatprep.mubr.msk.f32.mxu0 %vm2609_vm0, %v2608_v0 }
 0x845   :  { %2249 = vmatprep.subr.mxu1 %v2608_v0  ;;  %2267 = vmatprep.subr.mxu0 %v2608_v0 }
 0x846   :  { %2250 = vmatpush3.msra.mxu1 %v2789_v39 }
 0x847   :  { %2251 = vmatprep.subr.mxu1 %v2608_v0 }
 0x848   :  { %2252 = vmatpush3.msra.mxu1 %v2797_v40 }
 0x849   :  { %2286 = vmatprep.subr.mxu1 %v2608_v0 }
 0x8f9   :  { %v900_v23 = vpop.f32.mrf.mxu1 }
 0x8fa   :  { %v904_v24 = vadd.f32 %v900_v23, %v195_v22 }
 0x8fb   :  { %v2236_v25 = vpop.f32.mrf.mxu1 }
 0x8fc   :  { %2436 = vtanh.f32 %v904_v24  ;;  %v804_v27 = vpop.f32.mrf.mxu0  ;;  %v1972_v36 = vmul.f32 -1.442695, %v904_v24 }
 0x8fd   :  { %v805_v28 = vadd.f32 %v2854_v52, %v804_v27 }
 0x8fe   :  { %v2225_v30 = vpop.f32.mrf.mxu0 }
 0x8ff   :  { %2438 = vtanh.f32 %v805_v28  ;;  %v1970_v38 = vmul.f32 -1.442695, %v805_v28 }
 0x900   :  { %2440 = vpow2.f32 %v1972_v36 }
 0x901   :  { %2442 = vpow2.f32 %v1970_v38 }
 0x909   :  { %v2437_v32 = vpop.eup %2436 }
 0x90a   :  { %914 = vrot.lane.b32.xlu1 %v2437_v32, %s2610_s24 }
 0x90c   :  { %v2439_v34 = vpop.eup %2438 }
 0x90d   :  { %817 = vrot.lane.b32.xlu0 %v2439_v34, %s2610_s24  ;;  %v2441_v45 = vpop.eup %2440 }
 0x90e   :  { %v908_v41 = vadd.f32 1.0, %v2441_v45  ;;  %v2443_v42 = vpop.eup %2442 }
 0x90f   :  { %v811_v43 = vadd.f32 1.0, %v2443_v42 }
 0x910   :  { %2444 = vrcp.f32 %v908_v41 }
 0x911   :  { %2446 = vrcp.f32 %v811_v43 }
 0x91d   :  { %v2445_v44 = vpop.eup %2444 }
 0x91e   :  { %v2447_v54 = vpop.eup %2446  ;;  %v912_v56 = vmul.f32 %v2445_v44, %v2911_v6 }
 0x91f   :  { %v815_v59 = vmul.f32 %v2447_v54, %v2915_v12 }
 0x97c   :  { %v915_v50 = vpop.permute.xlu1 %914 }
 0x97d   :  { %v917_v53 = vmul.f32 %v2445_v44, %v915_v50 }
 0x97f   :  { %919 = vrot.lane.b32.xlu1 %v917_v53, %s2611_s25  ;;  %v818_v55 = vpop.permute.xlu0 %817 }
 0x980   :  { %v820_v46 = vmul.f32 %v2447_v54, %v818_v55 }
 0x982   :  { %822 = vrot.lane.b32.xlu0 %v820_v46, %s2611_s25 }
 0x9f1   :  { %v920_v57 = vpop.permute.xlu1 %919 }
 0x9f2   :  { %v2961_v58 = vadd.f32 %v920_v57, %v912_v56 }
 0x9f4   :  { %2448 = vtanh.f32 %v2961_v58  ;;  %v823_v60 = vpop.permute.xlu0 %822 }
 0x9f5   :  { %v2965_v61 = vadd.f32 %v823_v60, %v815_v59 }
 0x9f7   :  { %2450 = vtanh.f32 %v2965_v61 }
 0xa01   :  { %v2449_v62 = vpop.eup %2448 }
 0xa02   :  { %925 = vrot.lane.b32.xlu1 %v2449_v62, %s2610_s24 }
 0xa04   :  { %v2451_v63 = vpop.eup %2450 }
 0xa05   :  { %828 = vrot.lane.b32.xlu0 %v2451_v63, %s2610_s24 }
 0xa74   :  { %v926_v1 = vpop.permute.xlu1 %925 }
 0xa75   :  { %v928_v3 = vmul.f32 %v2445_v44, %v926_v1 }
 0xa77   :  { %930 = vrot.lane.b32.xlu0 %v928_v3, %s2611_s25  ;;  %v829_v5 = vpop.permute.xlu0 %828 }
 0xa78   :  { %v831_v6 = vmul.f32 %v2447_v54, %v829_v5 }
 0xa7a   :  { %934 = vrot.lane.b32.xlu1 %v831_v6, %s2610_s24 }
 0xae9   :  { %v931_v9 = vpop.permute.xlu0 %930 }
 0xaea   :  { %2265 = vmatmul.mubr.msk.f32.vlgmr.msra.gmra.mxu0 %vm218_vm2, %v931_v9 }
 0xaeb   :  { %2268 = vmatpush3.msra.mxu0 %v2725_v26  ;;  %2283 = vmatprep.mubr.msk.f32.mxu0 %vm2609_vm0, %v2608_v0 }
 0xaec   :  { %2269 = vmatprep.subr.mxu0 %v2608_v0  ;;  %v935_v11 = vpop.permute.xlu1 %934 }
 0xaed   :  { %2270 = vmatpush3.msra.mxu0 %v2738_v29  ;;  %v937_v12 = vsel %vm218_vm2, %v931_v9, %v935_v11 }
 0xaee   :  { %2271 = vmatprep.subr.mxu0 %v2608_v0  ;;  %2254 = vmatmul.mubr.msk.f32.vlgmr.msra.gmra.mxu1 %vm328_vm3, %v937_v12 }
 0xaef   :  { %2272 = vmatpush3.msra.mxu0 %v2748_v31  ;;  %2287 = vmatpush3.msra.mxu1 %v2670_v2 }
 0xaf0   :  { %2273 = vmatprep.subr.mxu0 %v2608_v0  ;;  %2288 = vmatprep.subr.mxu1 %v2608_v0 }
 0xaf1   :  { %2274 = vmatpush3.msra.mxu0 %v2759_v33  ;;  %2289 = vmatpush3.msra.mxu1 %v2676_v4 }
 0xaf2   :  { %2275 = vmatprep.subr.mxu0 %v2608_v0  ;;  %2290 = vmatprep.subr.mxu1 %v2608_v0 }
 0xaf3   :  { %2276 = vmatpush3.msra.mxu0 %v2770_v35  ;;  %2291 = vmatpush3.msra.mxu1 %v2686_v7 }
 0xaf4   :  { %2277 = vmatprep.subr.mxu0 %v2608_v0  ;;  %2292 = vmatprep.subr.mxu1 %v2608_v0 }
 0xaf5   :  { %2294 = vmatprep.mubr.msk.f32.mxu1 %vm2609_vm0, %v2608_v0  ;;  %2293 = vmatpush3.msra.mxu1 %v2691_v8 }
 0xaf6   :  { %2278 = vmatpush3.msra.mxu0 %v2781_v37  ;;  %2297 = vmatprep.subr.mxu1 %v2608_v0 }
 0xaf7   :  { %2279 = vmatprep.subr.mxu0 %v2608_v0 }
 0xaf8   :  { %2280 = vmatpush3.msra.mxu0 %v2789_v39 }
 0xaf9   :  { %2281 = vmatprep.subr.mxu0 %v2608_v0 }
 0xafa   :  { %2282 = vmatpush3.msra.mxu0 %v2797_v40 }
 0xafb   :  { %2316 = vmatprep.subr.mxu0 %v2608_v0 }
 0xbaa   :  { %v1103_v14 = vpop.f32.mrf.mxu0 }
 0xbab   :  { %v1107_v15 = vadd.f32 %v1103_v14, %v200_v13 }
 0xbac   :  { %v2266_v16 = vpop.f32.mrf.mxu0 }
 0xbad   :  { %2452 = vtanh.f32 %v1107_v15  ;;  %v1976_v22 = vmul.f32 -1.442695, %v1107_v15 }
 0xbae   :  { %v1007_v17 = vpop.f32.mrf.mxu1 }
 0xbaf   :  { %v1008_v18 = vadd.f32 %v2854_v52, %v1007_v17 }
 0xbb0   :  { %v2255_v19 = vpop.f32.mrf.mxu1 }
 0xbb1   :  { %2454 = vtanh.f32 %v1008_v18  ;;  %v1974_v23 = vmul.f32 -1.442695, %v1008_v18 }
 0xbb2   :  { %2456 = vpow2.f32 %v1976_v22 }
 0xbb3   :  { %2458 = vpow2.f32 %v1974_v23 }
 0xbba   :  { %v2453_v20 = vpop.eup %2452 }
 0xbbb   :  { %1117 = vrot.lane.b32.xlu1 %v2453_v20, %s2610_s24 }
 0xbbe   :  { %v2455_v21 = vpop.eup %2454 }
 0xbbf   :  { %1020 = vrot.lane.b32.xlu0 %v2455_v21, %s2610_s24  ;;  %v2457_v48 = vpop.eup %2456 }
 0xbc0   :  { %v1111_v24 = vadd.f32 1.0, %v2457_v48  ;;  %v2459_v25 = vpop.eup %2458 }
 0xbc1   :  { %v1014_v27 = vadd.f32 1.0, %v2459_v25 }
 0xbc2   :  { %2460 = vrcp.f32 %v1111_v24 }
 0xbc3   :  { %2462 = vrcp.f32 %v1014_v27 }
 0xbcf   :  { %v2461_v28 = vpop.eup %2460 }
 0xbd0   :  { %v2463_v34 = vpop.eup %2462  ;;  %v1115_v45 = vmul.f32 %v2461_v28, %v2961_v58 }
 0xbd1   :  { %v1018_v43 = vmul.f32 %v2463_v34, %v2965_v61 }
 0xc2d   :  { %v1118_v30 = vpop.permute.xlu1 %1117 }
 0xc2e   :  { %v1120_v32 = vmul.f32 %v2461_v28, %v1118_v30 }
 0xc30   :  { %1122 = vrot.lane.b32.xlu1 %v1120_v32, %s2611_s25 }
 0xc31   :  { %v1021_v36 = vpop.permute.xlu0 %1020 }
 0xc32   :  { %v1023_v38 = vmul.f32 %v2463_v34, %v1021_v36 }
 0xc34   :  { %1025 = vrot.lane.b32.xlu0 %v1023_v38, %s2611_s25 }
 0xca2   :  { %v1123_v41 = vpop.permute.xlu1 %1122 }
 0xca3   :  { %v3011_v42 = vadd.f32 %v1123_v41, %v1115_v45 }
 0xca5   :  { %2464 = vtanh.f32 %v3011_v42 }
 0xca6   :  { %v1026_v44 = vpop.permute.xlu0 %1025 }
 0xca7   :  { %v3015_v50 = vadd.f32 %v1026_v44, %v1018_v43 }
 0xca9   :  { %2466 = vtanh.f32 %v3015_v50 }
 0xcb2   :  { %v2465_v53 = vpop.eup %2464 }
 0xcb3   :  { %1128 = vrot.lane.b32.xlu1 %v2465_v53, %s2610_s24 }
 0xcb6   :  { %v2467_v54 = vpop.eup %2466 }
 0xcb7   :  { %1031 = vrot.lane.b32.xlu0 %v2467_v54, %s2610_s24 }
 0xd25   :  { %v1129_v55 = vpop.permute.xlu1 %1128 }
 0xd26   :  { %v1131_v46 = vmul.f32 %v2461_v28, %v1129_v55 }
 0xd28   :  { %1133 = vrot.lane.b32.xlu0 %v1131_v46, %s2611_s25 }
 0xd29   :  { %v1032_v56 = vpop.permute.xlu0 %1031 }
 0xd2a   :  { %v1034_v57 = vmul.f32 %v2463_v34, %v1032_v56 }
 0xd2c   :  { %1137 = vrot.lane.b32.xlu1 %v1034_v57, %s2610_s24 }
 0xd9a   :  { %v1134_v58 = vpop.permute.xlu0 %1133 }
 0xd9b   :  { %2295 = vmatmul.mubr.msk.f32.vlgmr.msra.gmra.mxu1 %vm218_vm2, %v1134_v58 }
 0xd9c   :  { %2298 = vmatpush3.msra.mxu1 %v2725_v26  ;;  %2313 = vmatprep.mubr.msk.f32.mxu1 %vm2609_vm0, %v2608_v0 }
 0xd9d   :  { %2299 = vmatprep.subr.mxu1 %v2608_v0 }
 0xd9e   :  { %2300 = vmatpush3.msra.mxu1 %v2738_v29  ;;  %v1138_v59 = vpop.permute.xlu1 %1137 }
 0xd9f   :  { %2301 = vmatprep.subr.mxu1 %v2608_v0  ;;  %v1140_v60 = vsel %vm218_vm2, %v1134_v58, %v1138_v59 }
 0xda0   :  { %2302 = vmatpush3.msra.mxu1 %v2748_v31  ;;  %2284 = vmatmul.mubr.msk.f32.vlgmr.msra.gmra.mxu0 %vm328_vm3, %v1140_v60 }
 0xda1   :  { %2303 = vmatprep.subr.mxu1 %v2608_v0  ;;  %2317 = vmatpush3.msra.mxu0 %v2670_v2  ;;  %v205_v2 = vadd.f32 %v2841_v47, %v2714_v10 }
 0xda2   :  { %2304 = vmatpush3.msra.mxu1 %v2759_v33  ;;  %2318 = vmatprep.subr.mxu0 %v2608_v0 }
 0xda3   :  { %2305 = vmatprep.subr.mxu1 %v2608_v0  ;;  %2319 = vmatpush3.msra.mxu0 %v2676_v4 }
 0xda4   :  { %2306 = vmatpush3.msra.mxu1 %v2770_v35  ;;  %2320 = vmatprep.subr.mxu0 %v2608_v0 }
 0xda5   :  { %2324 = vmatprep.mubr.msk.f32.mxu0 %vm2609_vm0, %v2608_v0  ;;  %2321 = vmatpush3.msra.mxu0 %v2686_v7 }
 0xda6   :  { %2307 = vmatprep.subr.mxu1 %v2608_v0  ;;  %2322 = vmatprep.subr.mxu0 %v2608_v0 }
 0xda7   :  { %2308 = vmatpush3.msra.mxu1 %v2781_v37  ;;  %2323 = vmatpush3.msra.mxu0 %v2691_v8 }
 0xda8   :  { %2309 = vmatprep.subr.mxu1 %v2608_v0  ;;  %2327 = vmatprep.subr.mxu0 %v2608_v0 }
 0xda9   :  { %2310 = vmatpush3.msra.mxu1 %v2789_v39 }
 0xdaa   :  { %2311 = vmatprep.subr.mxu1 %v2608_v0 }
 0xdab   :  { %2312 = vmatpush3.msra.mxu1 %v2797_v40 }
 0xdac   :  { %2346 = vmatprep.subr.mxu1 %v2608_v0 }
 0xe5b   :  { %v1306_v4 = vpop.f32.mrf.mxu1 }
 0xe5c   :  { %v1310_v7 = vadd.f32 %v1306_v4, %v205_v2 }
 0xe5d   :  { %v2296_v61 = vpop.f32.mrf.mxu1 }
 0xe5e   :  { %2468 = vtanh.f32 %v1310_v7  ;;  %v1980_v5 = vmul.f32 -1.442695, %v1310_v7 }
 0xe60   :  { %v1210_v8 = vpop.f32.mrf.mxu0 }
 0xe61   :  { %v1211_v62 = vadd.f32 %v2854_v52, %v1210_v8 }
 0xe62   :  { %v2285_v63 = vpop.f32.mrf.mxu0 }
 0xe63   :  { %2470 = vtanh.f32 %v1211_v62  ;;  %v1978_v6 = vmul.f32 -1.442695, %v1211_v62 }
 0xe64   :  { %2472 = vpow2.f32 %v1980_v5 }
 0xe65   :  { %2474 = vpow2.f32 %v1978_v6 }
 0xe6b   :  { %v2469_v1 = vpop.eup %2468 }
 0xe6c   :  { %1320 = vrot.lane.b32.xlu1 %v2469_v1, %s2610_s24 }
 0xe70   :  { %v2471_v3 = vpop.eup %2470 }
 0xe71   :  { %1223 = vrot.lane.b32.xlu0 %v2471_v3, %s2610_s24  ;;  %v2473_v47 = vpop.eup %2472 }
 0xe72   :  { %v1314_v9 = vadd.f32 1.0, %v2473_v47  ;;  %v2475_v11 = vpop.eup %2474 }
 0xe73   :  { %v1217_v12 = vadd.f32 1.0, %v2475_v11  ;;  %v2528_v11 = vld [vmem:[%s3194_s4 + $0x38] sm:$0xff] }
 0xe74   :  { %2476 = vrcp.f32 %v1314_v9 }
 0xe75   :  { %2478 = vrcp.f32 %v1217_v12  ;;  %v2529_v12 = vld [vmem:[%s3194_s4 + $0x30] sm:$0xff] }
 0xe81   :  { %v2477_v13 = vpop.eup %2476 }
 0xe82   :  { %v2479_v16 = vpop.eup %2478  ;;  %v1318_v19 = vmul.f32 %v2477_v13, %v3011_v42 }
 0xe83   :  { %v1221_v22 = vmul.f32 %v2479_v16, %v3015_v50 }
 0xede   :  { %v1321_v14 = vpop.permute.xlu1 %1320 }
 0xedf   :  { %v1323_v15 = vmul.f32 %v2477_v13, %v1321_v14 }
 0xee1   :  { %1325 = vrot.lane.b32.xlu1 %v1323_v15, %s2611_s25 }
 0xee3   :  { %v1224_v17 = vpop.permute.xlu0 %1223 }
 0xee4   :  { %v1226_v18 = vmul.f32 %v2479_v16, %v1224_v17  ;;  %v2532_v17 = vld [vmem:[%s3194_s4 + $0x18] sm:$0xff] }
 0xee6   :  { %1228 = vrot.lane.b32.xlu0 %v1226_v18, %s2611_s25  ;;  %v2533_v18 = vld [vmem:[%s3194_s4 + $0x10] sm:$0xff] }
 0xf53   :  { %v1326_v20 = vpop.permute.xlu1 %1325 }
 0xf54   :  { %v3061_v21 = vadd.f32 %v1326_v20, %v1318_v19  ;;  %v2534_v19 = vld [vmem:[%s3194_s4 + $0x8] sm:$0xff]  ;;  %v2535_v20 = vld [vmem:[%s3194_s4] sm:$0xff] }
 0xf56   :  { %2480 = vtanh.f32 %v3061_v21 }
 0xf58   :  { %v1229_v23 = vpop.permute.xlu0 %1228 }
 0xf59   :  { %v3065_v48 = vadd.f32 %v1229_v23, %v1221_v22 }
 0xf5b   :  { %2482 = vtanh.f32 %v3065_v48 }
 0xf63   :  { %v2481_v24 = vpop.eup %2480 }
 0xf64   :  { %1331 = vrot.lane.b32.xlu1 %v2481_v24, %s2610_s24 }
 0xf68   :  { %v2483_v25 = vpop.eup %2482 }
 0xf69   :  { %1234 = vrot.lane.b32.xlu0 %v2483_v25, %s2610_s24 }
 0xfd6   :  { %v1332_v27 = vpop.permute.xlu1 %1331 }
 0xfd7   :  { %v1334_v28 = vmul.f32 %v2477_v13, %v1332_v27  ;;  %v2530_v13 = vld [vmem:[%s3194_s4 + $0x28] sm:$0xff] }
 0xfd9   :  { %1336 = vrot.lane.b32.xlu0 %v1334_v28, %s2611_s25 }
 0xfdb   :  { %v1235_v30 = vpop.permute.xlu0 %1234 }
 0xfdc   :  { %v1237_v32 = vmul.f32 %v2479_v16, %v1235_v30  ;;  %v2531_v16 = vld [vmem:[%s3194_s4 + $0x20] sm:$0xff] }
 0xfde   :  { %1340 = vrot.lane.b32.xlu1 %v1237_v32, %s2610_s24 }
0x104b   :  { %v1337_v34 = vpop.permute.xlu0 %1336 }
0x104c   :  { %2325 = vmatmul.mubr.msk.f32.vlgmr.msra.gmra.mxu0 %vm218_vm2, %v1337_v34 }
0x104d   :  { %2328 = vmatpush3.msra.mxu0 %v2725_v26  ;;  %2343 = vmatprep.mubr.msk.f32.mxu0 %vm2609_vm0, %v2608_v0  ;;  %v2524_v26 = vld [vmem:[#allocation2 + $0x18] sm:$0xff] }
0x104e   :  { %2329 = vmatprep.subr.mxu0 %v2608_v0 }
0x104f   :  { %2330 = vmatpush3.msra.mxu0 %v2738_v29  ;;  %v2525_v29 = vld [vmem:[#allocation2 + $0x10] sm:$0xff] }
0x1050   :  { %2331 = vmatprep.subr.mxu0 %v2608_v0  ;;  %v1341_v36 = vpop.permute.xlu1 %1340 }
0x1051   :  { %2332 = vmatpush3.msra.mxu0 %v2748_v31  ;;  %v1343_v38 = vsel %vm218_vm2, %v1337_v34, %v1341_v36  ;;  %v2526_v31 = vld [vmem:[#allocation2 + $0x8] sm:$0xff] }
0x1052   :  { %2333 = vmatprep.subr.mxu0 %v2608_v0  ;;  %2314 = vmatmul.mubr.msk.f32.vlgmr.msra.gmra.mxu1 %vm328_vm3, %v1343_v38 }
0x1053   :  { %2334 = vmatpush3.msra.mxu0 %v2759_v33  ;;  %2347 = vmatpush3.msra.mxu1 %v2524_v26  ;;  %v2527_v33 = vld [vmem:[#allocation2] sm:$0xff] }
0x1054   :  { %2335 = vmatprep.subr.mxu0 %v2608_v0  ;;  %2348 = vmatprep.subr.mxu1 %v2608_v0 }
0x1055   :  { %2354 = vmatprep.mubr.msk.f32.mxu1 %vm2609_vm0, %v2608_v0  ;;  %2349 = vmatpush3.msra.mxu1 %v2525_v29 }
0x1056   :  { %2336 = vmatpush3.msra.mxu0 %v2770_v35  ;;  %2350 = vmatprep.subr.mxu1 %v2608_v0  ;;  %v210_v35 = vadd.f32 %v2714_v10, %v2849_v51 }
0x1057   :  { %2337 = vmatprep.subr.mxu0 %v2608_v0  ;;  %2351 = vmatpush3.msra.mxu1 %v2526_v31 }
0x1058   :  { %2338 = vmatpush3.msra.mxu0 %v2781_v37  ;;  %2352 = vmatprep.subr.mxu1 %v2608_v0 }
0x1059   :  { %2339 = vmatprep.subr.mxu0 %v2608_v0  ;;  %2353 = vmatpush3.msra.mxu1 %v2527_v33 }
0x105a   :  { %2340 = vmatpush3.msra.mxu0 %v2789_v39  ;;  %2357 = vmatprep.subr.mxu1 %v2608_v0 }
0x105b   :  { %2341 = vmatprep.subr.mxu0 %v2608_v0 }
0x105c   :  { %2342 = vmatpush3.msra.mxu0 %v2797_v40 }
0x105d   :  { %2376 = vmatprep.subr.mxu0 %v2608_v0 }
0x110c   :  { %v1509_v37 = vpop.f32.mrf.mxu0 }
0x110d   :  { %v1513_v45 = vadd.f32 %v1509_v37, %v210_v35 }
0x110e   :  { %v2326_v41 = vpop.f32.mrf.mxu0 }
0x110f   :  { %2484 = vtanh.f32 %v1513_v45  ;;  %v1984_v40 = vmul.f32 -1.442695, %v1513_v45 }
0x1112   :  { %v1413_v42 = vpop.f32.mrf.mxu1 }
0x1113   :  { %v1414_v43 = vadd.f32 %v2854_v52, %v1413_v42 }
0x1114   :  { %v2315_v44 = vpop.f32.mrf.mxu1 }
0x1115   :  { %2486 = vtanh.f32 %v1414_v43  ;;  %v1982_v53 = vmul.f32 -1.442695, %v1414_v43 }
0x1116   :  { %2488 = vpow2.f32 %v1984_v40 }
0x1117   :  { %2490 = vpow2.f32 %v1982_v53 }
0x111c   :  { %v2485_v39 = vpop.eup %2484 }
0x111d   :  { %1523 = vrot.lane.b32.xlu1 %v2485_v39, %s2610_s24 }
0x1122   :  { %v2487_v50 = vpop.eup %2486 }
0x1123   :  { %1426 = vrot.lane.b32.xlu0 %v2487_v50, %s2610_s24  ;;  %v2489_v10 = vpop.eup %2488 }
0x1124   :  { %v1517_v51 = vadd.f32 1.0, %v2489_v10  ;;  %v2491_v54 = vpop.eup %2490 }
0x1125   :  { %v1420_v55 = vadd.f32 1.0, %v2491_v54 }
0x1126   :  { %2492 = vrcp.f32 %v1517_v51 }
0x1127   :  { %2494 = vrcp.f32 %v1420_v55 }
0x1133   :  { %v2493_v46 = vpop.eup %2492 }
0x1134   :  { %v2495_v58 = vpop.eup %2494  ;;  %v1521_v2 = vmul.f32 %v2493_v46, %v3061_v21  ;;  %v2536_v21 = vld [vmem:[%s3193_s3] ss:$0 sm:$0xff] }
0x1135   :  { %v1424_v61 = vmul.f32 %v2495_v58, %v3065_v48  ;;  %v215_v22 = vadd.f32 %v2536_v21, %v2845_v49 }
0x118f   :  { %v1524_v56 = vpop.permute.xlu1 %1523 }
0x1190   :  { %v1526_v57 = vmul.f32 %v2493_v46, %v1524_v56 }
0x1192   :  { %1528 = vrot.lane.b32.xlu1 %v1526_v57, %s2611_s25 }
0x1195   :  { %v1427_v59 = vpop.permute.xlu0 %1426 }
0x1196   :  { %v1429_v60 = vmul.f32 %v2495_v58, %v1427_v59  ;;  %v2537_v59 = vld [vmem:[%s3195_s5] ss:$0 sm:$0xff] }
0x1198   :  { %1431 = vrot.lane.b32.xlu0 %v1429_v60, %s2611_s25 }
0x1204   :  { %v1529_v4 = vpop.permute.xlu1 %1528 }
0x1205   :  { %v3107_v7 = vadd.f32 %v1529_v4, %v1521_v2 }
0x1207   :  { %2496 = vtanh.f32 %v3107_v7 }
0x120a   :  { %v1432_v8 = vpop.permute.xlu0 %1431 }
0x120b   :  { %v3111_v62 = vadd.f32 %v1432_v8, %v1424_v61 }
0x120d   :  { %2498 = vtanh.f32 %v3111_v62 }
0x1214   :  { %v2497_v63 = vpop.eup %2496 }
0x1215   :  { %1534 = vrot.lane.b32.xlu1 %v2497_v63, %s2610_s24 }
0x121a   :  { %v2499_v1 = vpop.eup %2498 }
0x121b   :  { %1437 = vrot.lane.b32.xlu0 %v2499_v1, %s2610_s24 }
0x1287   :  { %v1535_v3 = vpop.permute.xlu1 %1534 }
0x1288   :  { %v1537_v5 = vmul.f32 %v2493_v46, %v1535_v3 }
0x128a   :  { %1539 = vrot.lane.b32.xlu0 %v1537_v5, %s2611_s25 }
0x128d   :  { %v1438_v6 = vpop.permute.xlu0 %1437 }
0x128e   :  { %v1440_v47 = vmul.f32 %v2495_v58, %v1438_v6 }
0x1290   :  { %1543 = vrot.lane.b32.xlu1 %v1440_v47, %s2610_s24  ;;  %v1850_v47 = vld [vmem:[#allocation5 + $0x18] sm:$0xff] }
0x12fc   :  { %v1540_v9 = vpop.permute.xlu0 %1539 }
0x12fd   :  { %2355 = vmatmul.mubr.msk.f32.vlgmr.msra.gmra.mxu1 %vm218_vm2, %v1540_v9 }
0x12fe   :  { %2358 = vmatpush3.msra.mxu1 %v2528_v11  ;;  %2373 = vmatprep.mubr.msk.f32.mxu1 %vm2609_vm0, %v2608_v0  ;;  %v1848_v11 = vld [vmem:[#allocation5 + $0x8] sm:$0xff] }
0x12ff   :  { %2359 = vmatprep.subr.mxu1 %v2608_v0 }
0x1300   :  { %2360 = vmatpush3.msra.mxu1 %v2529_v12  ;;  %v1847_v12 = vld [vmem:[#allocation5] sm:$0xff] }
0x1301   :  { %2361 = vmatprep.subr.mxu1 %v2608_v0 }
0x1302   :  { %2362 = vmatpush3.msra.mxu1 %v2530_v13  ;;  %v1544_v14 = vpop.permute.xlu1 %1543 }
0x1303   :  { %2363 = vmatprep.subr.mxu1 %v2608_v0  ;;  %v1546_v15 = vsel %vm218_vm2, %v1540_v9, %v1544_v14  ;;  %v1849_v9 = vld [vmem:[#allocation5 + $0x10] sm:$0xff] }
0x1304   :  { %2364 = vmatpush3.msra.mxu1 %v2531_v16  ;;  %2344 = vmatmul.mubr.msk.f32.vlgmr.msra.gmra.mxu0 %vm328_vm3, %v1546_v15 }
0x1305   :  { %2365 = vmatprep.subr.mxu1 %v2608_v0  ;;  %2384 = vmatprep.mubr.msk.f32.mxu0 %vm2609_vm0, %v2608_v0 }
0x1306   :  { %2366 = vmatpush3.msra.mxu1 %v2532_v17  ;;  %2377 = vmatpush3.msra.mxu0 %v1850_v47  ;;  %v1991_v17 = vld [vmem:[%s3197_s7] ss:$0 sm:$0xff] }
0x1307   :  { %2367 = vmatprep.subr.mxu1 %v2608_v0  ;;  %2378 = vmatprep.subr.mxu0 %v2608_v0 }
0x1308   :  { %2368 = vmatpush3.msra.mxu1 %v2533_v18  ;;  %2379 = vmatpush3.msra.mxu0 %v1849_v9 }
0x1309   :  { %2369 = vmatprep.subr.mxu1 %v2608_v0  ;;  %2380 = vmatprep.subr.mxu0 %v2608_v0 }
0x130a   :  { %2370 = vmatpush3.msra.mxu1 %v2534_v19  ;;  %2381 = vmatpush3.msra.mxu0 %v1848_v11 }
0x130b   :  { %2371 = vmatprep.subr.mxu1 %v2608_v0  ;;  %2382 = vmatprep.subr.mxu0 %v2608_v0 }
0x130c   :  { %2372 = vmatpush3.msra.mxu1 %v2535_v20  ;;  %2383 = vmatpush3.msra.mxu0 %v1847_v12 }
0x13bd   :  { %v1712_v23 = vpop.f32.mrf.mxu1 }
0x13be   :  { %v1716_v48 = vadd.f32 %v1712_v23, %v215_v22 }
0x13bf   :  { %v2356_v24 = vpop.f32.mrf.mxu1 }
0x13c0   :  { %2500 = vtanh.f32 %v1716_v48  ;;  %v1988_v34 = vmul.f32 -1.442695, %v1716_v48 }
0x13c4   :  { %v1616_v25 = vpop.f32.mrf.mxu0 }
0x13c5   :  { %v1617_v27 = vadd.f32 %v2854_v52, %v1616_v25 }
0x13c6   :  { %v2345_v28 = vpop.f32.mrf.mxu0 }
0x13c7   :  { %2502 = vtanh.f32 %v1617_v27  ;;  %v1986_v36 = vmul.f32 -1.442695, %v1617_v27 }
0x13c8   :  { %2504 = vpow2.f32 %v1988_v34 }
0x13c9   :  { %2506 = vpow2.f32 %v1986_v36 }
0x13cd   :  { %v2501_v30 = vpop.eup %2500 }
0x13ce   :  { %1726 = vrot.lane.b32.xlu1 %v2501_v30, %s2610_s24 }
0x13d4   :  { %v2503_v32 = vpop.eup %2502 }
0x13d5   :  { %1629 = vrot.lane.b32.xlu0 %v2503_v32, %s2610_s24  ;;  %v2505_v49 = vpop.eup %2504 }
0x13d6   :  { %v1720_v38 = vadd.f32 1.0, %v2505_v49  ;;  %v2507_v26 = vpop.eup %2506 }
0x13d7   :  { %v1623_v29 = vadd.f32 1.0, %v2507_v26 }
0x13d8   :  { %2508 = vrcp.f32 %v1720_v38 }
0x13d9   :  { %2510 = vrcp.f32 %v1623_v29 }
0x13e5   :  { %v2509_v31 = vpop.eup %2508 }
0x13e6   :  { %v2511_v35 = vpop.eup %2510  ;;  %v1724_v41 = vmul.f32 %v2509_v31, %v3107_v7 }
0x13e7   :  { %v1627_v44 = vmul.f32 %v2511_v35, %v3111_v62 }
0x1440   :  { %v1727_v52 = vpop.permute.xlu1 %1726 }
0x1441   :  { %v1729_v33 = vmul.f32 %v2509_v31, %v1727_v52 }
0x1443   :  { %1731 = vrot.lane.b32.xlu1 %v1729_v33, %s2611_s25 }
0x1447   :  { %v1630_v37 = vpop.permute.xlu0 %1629 }
0x1448   :  { %v1632_v45 = vmul.f32 %v2511_v35, %v1630_v37 }
0x144a   :  { %1634 = vrot.lane.b32.xlu0 %v1632_v45, %s2611_s25 }
0x14b5   :  { %v1732_v42 = vpop.permute.xlu1 %1731 }
0x14b6   :  { %v1734_v43 = vadd.f32 %v1732_v42, %v1724_v41 }
0x14b8   :  { %2512 = vtanh.f32 %v1734_v43 }
0x14bc   :  { %v1635_v39 = vpop.permute.xlu0 %1634 }
0x14bd   :  { %v1637_v50 = vadd.f32 %v1635_v39, %v1627_v44 }
0x14bf   :  { %2514 = vtanh.f32 %v1637_v50 }
0x14c5   :  { %v2513_v40 = vpop.eup %2512 }
0x14c6   :  { %1737 = vrot.lane.b32.xlu1 %v2513_v40, %s2610_s24 }
0x14cc   :  { %v2515_v53 = vpop.eup %2514 }
0x14cd   :  { %1640 = vrot.lane.b32.xlu0 %v2515_v53, %s2610_s24 }
0x1538   :  { %v1738_v10 = vpop.permute.xlu1 %1737 }
0x1539   :  { %v1740_v51 = vmul.f32 %v2509_v31, %v1738_v10 }
0x153b   :  { %1742 = vrot.lane.b32.xlu0 %v1740_v51, %s2611_s25 }
0x153f   :  { %v1641_v54 = vpop.permute.xlu0 %1640 }
0x1540   :  { %v1643_v55 = vmul.f32 %v2511_v35, %v1641_v54 }
0x1542   :  { %1746 = vrot.lane.b32.xlu1 %v1643_v55, %s2610_s24 }
0x15ad   :  { %v1743_v46 = vpop.permute.xlu0 %1742 }
0x15b4   :  { %v1747_v56 = vpop.permute.xlu1 %1746 }
0x15b5   :  { %v1749_v57 = vsel %vm218_vm2, %v1743_v46, %v1747_v56 }
0x15b6   :  { %2374 = vmatmul.mubr.msk.f32.vlgmr.msra.gmra.mxu1 %vm328_vm3, %v1749_v57 }
0x1676   :  { %v1819_v58 = vpop.f32.mrf.mxu1 }
0x1677   :  { %v1820_v60 = vadd.f32 %v2537_v59, %v1819_v58 }
0x1678   :  { %v2375_v2 = vpop.f32.mrf.mxu1 }
0x1679   :  { %2516 = vtanh.f32 %v1820_v60  ;;  %v1990_v7 = vmul.f32 -1.442695, %v1820_v60 }
0x167b   :  { %2518 = vpow2.f32 %v1990_v7 }
0x1686   :  { %v2517_v4 = vpop.eup %2516 }
0x1687   :  { %1832 = vrot.lane.b32.xlu0 %v2517_v4, %s2610_s24 }
0x1688   :  { %v2519_v61 = vpop.eup %2518 }
0x1689   :  { %v1826_v8 = vadd.f32 1.0, %v2519_v61 }
0x168b   :  { %2520 = vrcp.f32 %v1826_v8 }
0x1698   :  { %v2521_v62 = vpop.eup %2520 }
0x1699   :  { %v1830_v3 = vmul.f32 %v2521_v62, %v1637_v50 }
0x16f9   :  { %v1833_v63 = vpop.permute.xlu0 %1832 }
0x16fa   :  { %v1835_v1 = vmul.f32 %v2521_v62, %v1833_v63 }
0x16fc   :  { %1837 = vrot.lane.b32.xlu1 %v1835_v1, %s2611_s25 }
0x176e   :  { %v1838_v5 = vpop.permute.xlu1 %1837 }
0x176f   :  { %v1840_v6 = vadd.f32 %v1838_v5, %v1830_v3 }
0x1771   :  { %2522 = vtanh.f32 %v1840_v6 }
0x177e   :  { %v2523_v13 = vpop.eup %2522 }
0x177f   :  { %1843 = vrot.lane.b32.xlu0 %v2523_v13, %s2610_s24 }
0x17f1   :  { %v1844_v14 = vpop.permute.xlu0 %1843 }
0x17f2   :  { %v1846_v15 = vmul.f32 %v2521_v62, %v1844_v14 }
0x17f4   :  { %1859 = vrot.lane.b32.xlu1 %v1846_v15, %s2611_s25 }
0x1866   :  { %v1860_v16 = vpop.permute.xlu1 %1859 }
0x1867   :  { %2385 = vmatmul.mubr.msk.f32.vlgmr.msra.gmra.mxu0 %vm218_vm2, %v1860_v16 }
0x1927   :  { %v1929_v18 = vpop.f32.mrf.mxu0 }
0x1928   :  { %v1930_v19 = vadd.f32 %v1991_v17, %v1929_v18 }
0x1929   :  { %v2386_v0 = vpop.f32.mrf.mxu0 }
0x192a   :  { %1933 = vst [vmem:[#allocation7] sm:$0xff] %v1930_v19 }
0x192b   :  { %2589 = shalt.err (!%p2586_p0)
}
0x192c   :  { %1943 = dma.vmem_to_hbm [thread:$0]  %s1941_s0, 128, %s3198_s8, [#allocation4]  }
0x192d   :  { %2602 = dma.done.wait [#allocation4], 128  }
0x192e   :  { %2603 = vsyncadd [#allocation4], 4294967168 }
0x192f   :  { %1947 = vsyncpa [#allocation3], 1 }
0x1930   :  { %1948 = vsyncpa [#allocation6], 1 }
0x1931   :  { %1949 = vsyncpa [#allocation4], 1 }

</bundles_post_ra>
